<compile_context>
chip_gen: v7x
topology: tpu7x:2x2x1
jax: 0.10.0
libtpu: 0.0.40
codegen_flags: <defaults>
</compile_context>

<pallas_src>
import functools

import jax
import jax.numpy as jnp
from jax.experimental import pallas as pl
from jax.experimental.pallas import tpu as pltpu

EPS = 1e-6  # SimpleRMSNorm epsilon


def _round_up(x, m):
    return (x + m - 1) // m * m


def _norm_act_linear(p, w_t, b_col):
    # SimpleRMSNorm over the feature axis (axis 0 in transposed layout),
    # then ReLU (module default act='relu'), then Linear: W @ h + b.
    rms = jnp.sqrt(jnp.mean(p * p, axis=0, keepdims=True)) + EPS      # (1, tile)
    h = jnp.maximum(p / rms, 0.0)                                     # (dim, tile)
    return jnp.dot(w_t, h, preferred_element_type=jnp.float32) + b_col


def dpb_v5_kernel(
    b_ref, freq2_ref,
    wp_ref, bp_ref,
    w1_ref, b1_ref,
    w2_ref, b2_ref,
    w3_ref, b3_ref,
    out_ref,
    *, l,
):
    # transform_type == 1:  x -> cat(sin(x*freq), cos(x*freq))
    # Done without a concatenate: freq2 is freq stacked twice along rows;
    # the first l rows get sin, the last l rows get cos (same arguments).
    x = freq2_ref[...] * b_ref[...]                                   # (2L, tile)
    row = jax.lax.broadcasted_iota(jnp.int32, x.shape, 0)
    feat = jnp.where(row < l, jnp.sin(x), jnp.cos(x))                 # (2L, tile)

    # pos_proj
    pos = jnp.dot(wp_ref[...], feat,
                  preferred_element_type=jnp.float32) + bp_ref[...]   # (dim, tile)

    # residual = True branch of forward()
    pos = pos + _norm_act_linear(pos, w1_ref[...], b1_ref[...])
    pos = pos + _norm_act_linear(pos, w2_ref[...], b2_ref[...])
    out_ref[...] = _norm_act_linear(pos, w3_ref[...], b3_ref[...])    # (outdim, tile)


def dynamic_pos_bias_v5(biases, params, *, tile_n=2048):
    """biases: (N, 1) fp32 relative-position coordinates.

    params: dict of weights (see init_params; PyTorch (out, in) layout).
    Returns (N, outdim) fp32.
    tile_n: rows per grid step.  Large tiles amortize per-step overhead; on
    v7x keep tile_n <= N/2 so both TensorCores get a grid step.
    """
    n = biases.shape[0]
    l = params["freq"].shape[1]
    outdim = params["w3"].shape[0]

    # Tokens live on the lane axis: pad N to lane-aligned whole tiles (cheap —
    # this is a (1, N) float vector) and slice the result back afterwards.
    n_pad = _round_up(n, 128)
    tile = _round_up(min(tile_n, n_pad), 128)
    n_pad = _round_up(n_pad, tile)
    grid = (n_pad // tile,)

    b_t = jnp.zeros((1, n_pad), jnp.float32).at[0, :n].set(
        biases.reshape(-1).astype(jnp.float32))
    # freq stacked twice as a column vector (2L, 1); rows [0, L) -> sin,
    # rows [L, 2L) -> cos inside the kernel.
    freq2 = jnp.concatenate(
        [params["freq"], params["freq"]], axis=1).reshape(2 * l, 1)

    def bcast(arr):
        shp = arr.shape  # whole-array block, same for every grid step
        return pl.BlockSpec(shp, lambda i, _s=shp: (0,) * len(_s))

    in_specs = [
        pl.BlockSpec((1, tile), lambda i: (0, i)),        # biases (transposed)
        bcast(freq2),                                     # freq (stacked)
        bcast(params["wp"]), bcast(params["bp"]),         # pos_proj
        bcast(params["w1"]), bcast(params["b1"]),         # pos1
        bcast(params["w2"]), bcast(params["b2"]),         # pos2
        bcast(params["w3"]), bcast(params["b3"]),         # pos3
    ]
    out_spec = pl.BlockSpec((outdim, tile), lambda i: (0, i))

    out_t = pl.pallas_call(
        functools.partial(dpb_v5_kernel, l=l),
        out_shape=jax.ShapeDtypeStruct((outdim, n_pad), jnp.float32),
        grid_spec=pltpu.PrefetchScalarGridSpec(
            num_scalar_prefetch=0,
            grid=grid,
            in_specs=in_specs,
            out_specs=out_spec,
        ),
        compiler_params=pltpu.CompilerParams(
            dimension_semantics=("parallel",)),
    )(
        b_t, freq2,
        params["wp"], params["bp"],
        params["w1"], params["b1"],
        params["w2"], params["b2"],
        params["w3"], params["b3"],
    )

    # Layout plumbing only: (outdim, N_pad) -> (N, outdim).
    return out_t[:, :n].T


def init_params(key, *, dim=32, outdim=16, l=10):
    """Deterministic synthetic parameters matching DynamicPosBiasV5.__init__.

    Linear weights are stored PyTorch-style: W (out_features, in_features),
    bias as a column (out_features, 1).
    """
    ks = jax.random.split(key, 8)

    def lin(kw, kb, fan_in, fan_out):
        bound = 1.0 / jnp.sqrt(fan_in)
        w = jax.random.uniform(kw, (fan_out, fan_in), jnp.float32, -bound, bound)
        b = jax.random.uniform(kb, (fan_out, 1), jnp.float32, -bound, bound)
        return w, b

    wp, bp = lin(ks[0], ks[1], 2 * l, dim)
    w1, b1 = lin(ks[2], ks[3], dim, dim)
    w2, b2 = lin(ks[4], ks[5], dim, dim)
    w3, b3 = lin(ks[6], ks[7], dim, outdim)
    freq = (jnp.pi * (2.0 ** jnp.arange(l, dtype=jnp.float32))).reshape(1, l)
    return dict(freq=freq, wp=wp, bp=bp, w1=w1, b1=b1,
                w2=w2, b2=b2, w3=w3, b3=b3)


def reference_forward(biases, p):
    """Pure-JAX reference mirroring the PyTorch forward (residual=True)."""
    x = biases * p["freq"]                                    # (N, L)
    feat = jnp.concatenate([jnp.sin(x), jnp.cos(x)], axis=-1)  # (N, 2L)

    def blk(v, w, b):
        rms = jnp.sqrt(jnp.mean(v * v, axis=-1, keepdims=True)) + EPS
        h = jnp.maximum(v / rms, 0.0)
        return h @ w.T + b.reshape(1, -1)

    pos = feat @ p["wp"].T + p["bp"].reshape(1, -1)
    pos = pos + blk(pos, p["w1"], p["b1"])
    pos = pos + blk(pos, p["w2"], p["b2"])
    return blk(pos, p["w3"], p["b3"])


if __name__ == "__main__":
    key = jax.random.PRNGKey(0)
    k_param, k_bias = jax.random.split(key)

    N, DIM, OUTDIM, L = 256, 32, 16, 10
    params = init_params(k_param, dim=DIM, outdim=OUTDIM, l=L)

    # synthetic relative-position coordinates, shape (N, 1)
    biases = jax.random.uniform(k_bias, (N, 1), jnp.float32, -1.0, 1.0)

    out = dynamic_pos_bias_v5(biases, params, tile_n=2048)
    out = jax.block_until_ready(out)

    ref = reference_forward(biases, params)
    assert out.shape == (N, OUTDIM)
    assert jnp.allclose(out, ref, atol=2e-4, rtol=2e-4), "mismatch vs JAX reference"

    print("KERNEL_OK")
</pallas_src>

<mosaic_0001>
module attributes {stable_mosaic.version = 11 : i64} {
  func.func @dpb_v5_kernel(%arg0: i32, %arg1: memref<1x256xf32, #tpu.memory_space<vmem>>, %arg2: memref<20x1xf32, #tpu.memory_space<vmem>>, %arg3: memref<32x20xf32, #tpu.memory_space<vmem>>, %arg4: memref<32x1xf32, #tpu.memory_space<vmem>>, %arg5: memref<32x32xf32, #tpu.memory_space<vmem>>, %arg6: memref<32x1xf32, #tpu.memory_space<vmem>>, %arg7: memref<32x32xf32, #tpu.memory_space<vmem>>, %arg8: memref<32x1xf32, #tpu.memory_space<vmem>>, %arg9: memref<16x32xf32, #tpu.memory_space<vmem>>, %arg10: memref<16x1xf32, #tpu.memory_space<vmem>>, %arg11: memref<16x256xf32, #tpu.memory_space<vmem>>) attributes {dimension_semantics = [#tpu.dimension_semantics<parallel>], iteration_bounds = array<i64: 1>, scalar_prefetch = 0 : i64, scratch_operands = 0 : i64, tpu.core_type = #tpu.core_type<tc>, window_params = [{transform_indices = @transform_0, window_bounds = array<i64: 1, 256>}, {pipeline_mode = #tpu.pipeline_mode<synchronous>, transform_indices = @transform_1, window_bounds = array<i64: 20, 1>}, {pipeline_mode = #tpu.pipeline_mode<synchronous>, transform_indices = @transform_2, window_bounds = array<i64: 32, 20>}, {pipeline_mode = #tpu.pipeline_mode<synchronous>, transform_indices = @transform_3, window_bounds = array<i64: 32, 1>}, {pipeline_mode = #tpu.pipeline_mode<synchronous>, transform_indices = @transform_4, window_bounds = array<i64: 32, 32>}, {pipeline_mode = #tpu.pipeline_mode<synchronous>, transform_indices = @transform_5, window_bounds = array<i64: 32, 1>}, {pipeline_mode = #tpu.pipeline_mode<synchronous>, transform_indices = @transform_6, window_bounds = array<i64: 32, 32>}, {pipeline_mode = #tpu.pipeline_mode<synchronous>, transform_indices = @transform_7, window_bounds = array<i64: 32, 1>}, {pipeline_mode = #tpu.pipeline_mode<synchronous>, transform_indices = @transform_8, window_bounds = array<i64: 16, 32>}, {pipeline_mode = #tpu.pipeline_mode<synchronous>, transform_indices = @transform_9, window_bounds = array<i64: 16, 1>}, {transform_indices = @transform_10, window_bounds = array<i64: 16, 256>}]} {
    %c0 = arith.constant 0 : index
    %c0_0 = arith.constant 0 : index
    %0 = vector.load %arg2[%c0, %c0_0] : memref<20x1xf32, #tpu.memory_space<vmem>>, vector<20x1xf32>
    %c0_1 = arith.constant 0 : index
    %c0_2 = arith.constant 0 : index
    %1 = vector.load %arg1[%c0_1, %c0_2] : memref<1x256xf32, #tpu.memory_space<vmem>>, vector<1x256xf32>
    %2 = vector.broadcast %0 : vector<20x1xf32> to vector<20x256xf32>
    %3 = vector.broadcast %1 : vector<1x256xf32> to vector<20x256xf32>
    %4 = arith.mulf %2, %3 : vector<20x256xf32>
    %5 = tpu.iota {dimensions = array<i32: 0>} : vector<20x256xi32>
    %c10_i32 = arith.constant 10 : i32
    %6 = vector.broadcast %c10_i32 : i32 to vector<20x256xi32>
    %7 = arith.cmpi slt, %5, %6 : vector<20x256xi32>
    %8 = math.sin %4 : vector<20x256xf32>
    %9 = math.cos %4 : vector<20x256xf32>
    %10 = arith.select %7, %8, %9 : vector<20x256xi1>, vector<20x256xf32>
    %c0_3 = arith.constant 0 : index
    %c0_4 = arith.constant 0 : index
    %11 = vector.load %arg3[%c0_3, %c0_4] : memref<32x20xf32, #tpu.memory_space<vmem>>, vector<32x20xf32>
    %cst = arith.constant dense<0.000000e+00> : vector<32x256xf32>
    %12 = tpu.matmul %11, %10, %cst {dimension_numbers = #tpu.dot_dimension_numbers<[1], [0], [0], [1], [0, 0, 1, 1], [], []>} : vector<32x20xf32>, vector<20x256xf32>, vector<32x256xf32> -> vector<32x256xf32>
    %c0_5 = arith.constant 0 : index
    %c0_6 = arith.constant 0 : index
    %13 = vector.load %arg4[%c0_5, %c0_6] : memref<32x1xf32, #tpu.memory_space<vmem>>, vector<32x1xf32>
    %14 = vector.broadcast %13 : vector<32x1xf32> to vector<32x256xf32>
    %15 = arith.addf %12, %14 : vector<32x256xf32>
    %c0_7 = arith.constant 0 : index
    %c0_8 = arith.constant 0 : index
    %16 = vector.load %arg5[%c0_7, %c0_8] : memref<32x32xf32, #tpu.memory_space<vmem>>, vector<32x32xf32>
    %c0_9 = arith.constant 0 : index
    %c0_10 = arith.constant 0 : index
    %17 = vector.load %arg6[%c0_9, %c0_10] : memref<32x1xf32, #tpu.memory_space<vmem>>, vector<32x1xf32>
    %18 = arith.mulf %15, %15 : vector<32x256xf32>
    %cst_11 = arith.constant dense<0.000000e+00> : vector<256xf32>
    %19 = vector.multi_reduction <add>, %18, %cst_11 [0] : vector<32x256xf32> to vector<256xf32>
    %20 = vector.shape_cast %19 : vector<256xf32> to vector<1x256xf32>
    %cst_12 = arith.constant 3.200000e+01 : f32
    %21 = vector.broadcast %cst_12 : f32 to vector<1x256xf32>
    %22 = arith.divf %20, %21 : vector<1x256xf32>
    %23 = math.sqrt %22 : vector<1x256xf32>
    %cst_13 = arith.constant 9.99999997E-7 : f32
    %24 = vector.broadcast %cst_13 : f32 to vector<1x256xf32>
    %25 = arith.addf %23, %24 : vector<1x256xf32>
    %26 = vector.broadcast %25 : vector<1x256xf32> to vector<32x256xf32>
    %27 = arith.divf %15, %26 : vector<32x256xf32>
    %cst_14 = arith.constant 0.000000e+00 : f32
    %28 = vector.broadcast %cst_14 : f32 to vector<32x256xf32>
    %29 = arith.maximumf %27, %28 : vector<32x256xf32>
    %cst_15 = arith.constant dense<0.000000e+00> : vector<32x256xf32>
    %30 = tpu.matmul %16, %29, %cst_15 {dimension_numbers = #tpu.dot_dimension_numbers<[1], [0], [0], [1], [0, 0, 1, 1], [], []>} : vector<32x32xf32>, vector<32x256xf32>, vector<32x256xf32> -> vector<32x256xf32>
    %31 = vector.broadcast %17 : vector<32x1xf32> to vector<32x256xf32>
    %32 = arith.addf %30, %31 : vector<32x256xf32>
    %33 = arith.addf %15, %32 : vector<32x256xf32>
    %c0_16 = arith.constant 0 : index
    %c0_17 = arith.constant 0 : index
    %34 = vector.load %arg7[%c0_16, %c0_17] : memref<32x32xf32, #tpu.memory_space<vmem>>, vector<32x32xf32>
    %c0_18 = arith.constant 0 : index
    %c0_19 = arith.constant 0 : index
    %35 = vector.load %arg8[%c0_18, %c0_19] : memref<32x1xf32, #tpu.memory_space<vmem>>, vector<32x1xf32>
    %36 = arith.mulf %33, %33 : vector<32x256xf32>
    %cst_20 = arith.constant dense<0.000000e+00> : vector<256xf32>
    %37 = vector.multi_reduction <add>, %36, %cst_20 [0] : vector<32x256xf32> to vector<256xf32>
    %38 = vector.shape_cast %37 : vector<256xf32> to vector<1x256xf32>
    %cst_21 = arith.constant 3.200000e+01 : f32
    %39 = vector.broadcast %cst_21 : f32 to vector<1x256xf32>
    %40 = arith.divf %38, %39 : vector<1x256xf32>
    %41 = math.sqrt %40 : vector<1x256xf32>
    %cst_22 = arith.constant 9.99999997E-7 : f32
    %42 = vector.broadcast %cst_22 : f32 to vector<1x256xf32>
    %43 = arith.addf %41, %42 : vector<1x256xf32>
    %44 = vector.broadcast %43 : vector<1x256xf32> to vector<32x256xf32>
    %45 = arith.divf %33, %44 : vector<32x256xf32>
    %cst_23 = arith.constant 0.000000e+00 : f32
    %46 = vector.broadcast %cst_23 : f32 to vector<32x256xf32>
    %47 = arith.maximumf %45, %46 : vector<32x256xf32>
    %cst_24 = arith.constant dense<0.000000e+00> : vector<32x256xf32>
    %48 = tpu.matmul %34, %47, %cst_24 {dimension_numbers = #tpu.dot_dimension_numbers<[1], [0], [0], [1], [0, 0, 1, 1], [], []>} : vector<32x32xf32>, vector<32x256xf32>, vector<32x256xf32> -> vector<32x256xf32>
    %49 = vector.broadcast %35 : vector<32x1xf32> to vector<32x256xf32>
    %50 = arith.addf %48, %49 : vector<32x256xf32>
    %51 = arith.addf %33, %50 : vector<32x256xf32>
    %c0_25 = arith.constant 0 : index
    %c0_26 = arith.constant 0 : index
    %52 = vector.load %arg9[%c0_25, %c0_26] : memref<16x32xf32, #tpu.memory_space<vmem>>, vector<16x32xf32>
    %c0_27 = arith.constant 0 : index
    %c0_28 = arith.constant 0 : index
    %53 = vector.load %arg10[%c0_27, %c0_28] : memref<16x1xf32, #tpu.memory_space<vmem>>, vector<16x1xf32>
    %54 = arith.mulf %51, %51 : vector<32x256xf32>
    %cst_29 = arith.constant dense<0.000000e+00> : vector<256xf32>
    %55 = vector.multi_reduction <add>, %54, %cst_29 [0] : vector<32x256xf32> to vector<256xf32>
    %56 = vector.shape_cast %55 : vector<256xf32> to vector<1x256xf32>
    %cst_30 = arith.constant 3.200000e+01 : f32
    %57 = vector.broadcast %cst_30 : f32 to vector<1x256xf32>
    %58 = arith.divf %56, %57 : vector<1x256xf32>
    %59 = math.sqrt %58 : vector<1x256xf32>
    %cst_31 = arith.constant 9.99999997E-7 : f32
    %60 = vector.broadcast %cst_31 : f32 to vector<1x256xf32>
    %61 = arith.addf %59, %60 : vector<1x256xf32>
    %62 = vector.broadcast %61 : vector<1x256xf32> to vector<32x256xf32>
    %63 = arith.divf %51, %62 : vector<32x256xf32>
    %cst_32 = arith.constant 0.000000e+00 : f32
    %64 = vector.broadcast %cst_32 : f32 to vector<32x256xf32>
    %65 = arith.maximumf %63, %64 : vector<32x256xf32>
    %cst_33 = arith.constant dense<0.000000e+00> : vector<16x256xf32>
    %66 = tpu.matmul %52, %65, %cst_33 {dimension_numbers = #tpu.dot_dimension_numbers<[1], [0], [0], [1], [0, 0, 1, 1], [], []>} : vector<16x32xf32>, vector<32x256xf32>, vector<16x256xf32> -> vector<16x256xf32>
    %67 = vector.broadcast %53 : vector<16x1xf32> to vector<16x256xf32>
    %68 = arith.addf %66, %67 : vector<16x256xf32>
    %c0_34 = arith.constant 0 : index
    %c0_35 = arith.constant 0 : index
    %69 = vector.load %arg11[%c0_34, %c0_35] : memref<16x256xf32, #tpu.memory_space<vmem>>, vector<16x256xf32>
    tpu.vector_store %arg11[%c0_34, %c0_35], %68 {strides = array<i32>} : memref<16x256xf32, #tpu.memory_space<vmem>>, vector<16x256xf32>,
    return
  }
  func.func @transform_0(%arg0: i32) -> (i32, i32) {
    %c0_i32 = arith.constant 0 : i32
    %c0_i32_0 = arith.constant 0 : i32
    return %c0_i32, %arg0 : i32, i32
  }
  func.func @transform_1(%arg0: i32) -> (i32, i32) {
    %c0_i32 = arith.constant 0 : i32
    %c0_i32_0 = arith.constant 0 : i32
    %c0_i32_1 = arith.constant 0 : i32
    return %c0_i32, %c0_i32_0 : i32, i32
  }
  func.func @transform_2(%arg0: i32) -> (i32, i32) {
    %c0_i32 = arith.constant 0 : i32
    %c0_i32_0 = arith.constant 0 : i32
    %c0_i32_1 = arith.constant 0 : i32
    return %c0_i32, %c0_i32_0 : i32, i32
  }
  func.func @transform_3(%arg0: i32) -> (i32, i32) {
    %c0_i32 = arith.constant 0 : i32
    %c0_i32_0 = arith.constant 0 : i32
    %c0_i32_1 = arith.constant 0 : i32
    return %c0_i32, %c0_i32_0 : i32, i32
  }
  func.func @transform_4(%arg0: i32) -> (i32, i32) {
    %c0_i32 = arith.constant 0 : i32
    %c0_i32_0 = arith.constant 0 : i32
    %c0_i32_1 = arith.constant 0 : i32
    return %c0_i32, %c0_i32_0 : i32, i32
  }
  func.func @transform_5(%arg0: i32) -> (i32, i32) {
    %c0_i32 = arith.constant 0 : i32
    %c0_i32_0 = arith.constant 0 : i32
    %c0_i32_1 = arith.constant 0 : i32
    return %c0_i32, %c0_i32_0 : i32, i32
  }
  func.func @transform_6(%arg0: i32) -> (i32, i32) {
    %c0_i32 = arith.constant 0 : i32
    %c0_i32_0 = arith.constant 0 : i32
    %c0_i32_1 = arith.constant 0 : i32
    return %c0_i32, %c0_i32_0 : i32, i32
  }
  func.func @transform_7(%arg0: i32) -> (i32, i32) {
    %c0_i32 = arith.constant 0 : i32
    %c0_i32_0 = arith.constant 0 : i32
    %c0_i32_1 = arith.constant 0 : i32
    return %c0_i32, %c0_i32_0 : i32, i32
  }
  func.func @transform_8(%arg0: i32) -> (i32, i32) {
    %c0_i32 = arith.constant 0 : i32
    %c0_i32_0 = arith.constant 0 : i32
    %c0_i32_1 = arith.constant 0 : i32
    return %c0_i32, %c0_i32_0 : i32, i32
  }
  func.func @transform_9(%arg0: i32) -> (i32, i32) {
    %c0_i32 = arith.constant 0 : i32
    %c0_i32_0 = arith.constant 0 : i32
    %c0_i32_1 = arith.constant 0 : i32
    return %c0_i32, %c0_i32_0 : i32, i32
  }
  func.func @transform_10(%arg0: i32) -> (i32, i32) {
    %c0_i32 = arith.constant 0 : i32
    %c0_i32_0 = arith.constant 0 : i32
    return %c0_i32, %arg0 : i32, i32
  }
}

</mosaic_0001>

<bundles_post_ra>
// kernel: tpu_custom_call.1
= control target key start
LH: loop header
LB: loop body
LE: loop exit
PB: predicated region body
PF: predicated region fallthrough
CT: control target
= control target key end

     0   :  { %v2244_v2 = vmov 0   ;;  %s3125_s0 = inlined_call_operand.vmem [shape: f32[1,256], index: 0, kind: input, shape index: {}]   ;;  %s3126_s1 = inlined_call_operand.vmem [shape: f32[20,1], index: 1, kind: input, shape index: {}]   ;;  %s3127_s2 = inlined_call_operand.vmem [shape: f32[32,20], index: 2, kind: input, shape index: {}]   ;;  %s3128_s3 = inlined_call_operand.vmem [shape: f32[32,1], index: 3, kind: input, shape index: {}]   ;;  %s3129_s4 = inlined_call_operand.vmem [shape: f32[32,32], index: 4, kind: input, shape index: {}]   ;;  %s3130_s5 = inlined_call_operand.vmem [shape: f32[32,1], index: 5, kind: input, shape index: {}]   ;;  %s3131_s6 = inlined_call_operand.vmem [shape: f32[32,32], index: 6, kind: input, shape index: {}]   ;;  %s3132_s7 = inlined_call_operand.vmem [shape: f32[32,1], index: 7, kind: input, shape index: {}]   ;;  %s3133_s8 = inlined_call_operand.vmem [shape: f32[16,32], index: 8, kind: input, shape index: {}]   ;;  %s3134_s9 = inlined_call_operand.vmem [shape: f32[16,1], index: 9, kind: input, shape index: {}]   ;;  %s3135_s10 = inlined_call_operand.hbm [shape: f32[16,256], index: 10, kind: output, shape index: {}]  }
   0x1   :  { %v38_v0 = vld [vmem:[%s3126_s1 + $0x10] sm:$0xf]  ;;  %v37_v1 = vld [vmem:[%s3126_s1 + $0x8] sm:$0xff]  ;;  %2171 = vset.pattern.permute.xlu1 %v2244_v2  ;;  %2170 = vset.pattern.permute.xlu0 %v2244_v2  ;;  %v1331_v3 = vld [vmem:[%s3128_s3] sm:$0xff] }
   0x2   :  { %52 = vperm.xlu1 %2171, %v38_v0   ;;  %47 = vperm.xlu0 %2170, %v37_v1   ;;  %v36_v4 = vld [vmem:[%s3126_s1] sm:$0xff] }
   0x6   :  { %1337 = vperm.xlu1 %2171, %v1331_v3   ;;  %42 = vperm.xlu0 %2170, %v36_v4  }
   0x7   :  { %15 = vsyncpa [#allocation3], 0  ;;  %v1333_v5 = vld [vmem:[%s3128_s3 + $0x10] sm:$0xff]  ;;  %v1332_v6 = vld [vmem:[%s3128_s3 + $0x8] sm:$0xff]  ;;  %v56_v18 = vlaneseq  ;;  %v2245_v51 = vmov 683565275  }
   0x8   :  { %v1468_v7 = vld [vmem:[%s3130_s5] sm:$0xff]  ;;  %v1334_v8 = vld [vmem:[%s3128_s3 + $0x18] sm:$0xff]  ;;  %v1470_v9 = vld [vmem:[%s3130_s5 + $0x10] sm:$0xff]  ;;  %v2246_v53 = vmov 2475754826   ;;  %s2252_s25 = smov [#allocation2]  }
   0x9   :  { %v1469_v10 = vld [vmem:[%s3130_s5 + $0x8] sm:$0xff]  ;;  %v1669_v11 = vld [vmem:[%s3132_s7] sm:$0xff]  ;;  %v1471_v12 = vld [vmem:[%s3130_s5 + $0x18] sm:$0xff]  ;;  %v2361_v19 = vshrl.u32 %v56_v18, 7  ;;  %v2247_v55 = vmov 2131351028  }
   0xa   :  { %1347 = vperm.xlu1 %2171, %v1333_v5   ;;  %1342 = vperm.xlu0 %2170, %v1332_v6   ;;  %v1671_v13 = vld [vmem:[%s3132_s7 + $0x10] sm:$0xff]  ;;  %v1670_v14 = vld [vmem:[%s3132_s7 + $0x8] sm:$0xff]  ;;  %v1866_v15 = vld [vmem:[%s3134_s9] sm:$0xff]  ;;  %v2248_v58 = vmov 2102212464  }
   0xb   :  { %v1672_v16 = vld [vmem:[%s3132_s7 + $0x18] sm:$0xff]  ;;  %v1867_v17 = vld [vmem:[%s3134_s9 + $0x8] sm:$0xff]  ;;  %v58_v20 = vsub.s32 0, %v2361_v19  ;;  %v62_v21 = vsub.s32 1, %v2361_v19  ;;  %v39_v22 = vld [vmem:[%s3125_s0] sm:$0x3] }
   0xc   :  { %v2249_v60 = vmov 920167782   ;;  %v2250_v4 = vmov 1326507024   ;;  %s2032_s0 = sshll.u32 %s2252_s25, 4  ;;  %s2033_s0 = int_to_ptr.vmem [resolvable:$true] %s2032_s0 }
   0xd   :  { %v2368_v23 = vrot.slane %v39_v22, %v58_v20  ;;  %v2370_v24 = vrot.slane %v39_v22, %v62_v21  ;;  %p2225_p1 = scmp.lt.s32.totalorder %s2033_s0, %s2033_s0 }
   0xe   :  { %1537 = vperm.xlu1 %2171, %v1468_v7   ;;  %1352 = vperm.xlu0 %2170, %v1334_v8  }
  0x12   :  { %1547 = vperm.xlu1 %2171, %v1470_v9   ;;  %1542 = vperm.xlu0 %2170, %v1469_v10  }
  0x16   :  { %1737 = vperm.xlu1 %2171, %v1669_v11   ;;  %1552 = vperm.xlu0 %2170, %v1471_v12  }
  0x1a   :  { %1747 = vperm.xlu1 %2171, %v1671_v13   ;;  %1742 = vperm.xlu0 %2170, %v1670_v14  }
  0x1e   :  { %1932 = vperm.xlu1 %2171, %v1866_v15   ;;  %1752 = vperm.xlu0 %2170, %v1672_v16  }
  0x22   :  { %1937 = vperm.xlu0 %2170, %v1867_v17  }
  0x81   :  { %v53_v25 = vpop.permute.xlu1 %52  ;;  %v48_v29 = vpop.permute.xlu0 %47 }
  0x82   :  { %v2373_v26 = vmul.f32 %v2368_v23, %v53_v25  ;;  %v2376_v27 = vmul.f32 %v2370_v24, %v53_v25  ;;  %v2381_v33 = vmul.f32 %v2368_v23, %v48_v29  ;;  %v2389_v45 = vmul.f32 %v2370_v24, %v48_v29 }
  0x84   :  { %v1118_v28 = vand.u32 2139095040, %v2373_v26  ;;  %v1221_v30 = vand.u32 2139095040, %v2376_v27  ;;  %v1115_v35 = vand.u32 2147483647, %v2373_v26  ;;  %v1218_v38 = vand.u32 2147483647, %v2376_v27 }
  0x85   :  { %v290_v40 = vand.u32 2139095040, %v2381_v33  ;;  %v287_v48 = vand.u32 2147483647, %v2381_v33  ;;  %v394_v2 = vand.u32 2139095040, %v2389_v45 }
  0x86   :  { %v1119_v31 = vshrl.u32 %v1118_v28, 23  ;;  %v1222_v32 = vshrl.u32 %v1221_v30, 23  ;;  %v1122_v41 = vand.u32 8388607, %v1115_v35  ;;  %v2395_v47 = vand.u32 8388607, %v1218_v38 }
  0x87   :  { %v291_v49 = vshrl.u32 %v290_v40, 23  ;;  %v395_v20 = vshrl.u32 %v394_v2, 23 }
  0x88   :  { %v2083_v34 = vadd.s32 4294967169, %v1119_v31  ;;  %v2087_v36 = vadd.s32 4294967169, %v1222_v32  ;;  %v1123_v57 = vor.u32 8388608, %v1122_v41  ;;  %v1226_v2 = vor.u32 8388608, %v2395_v47 }
  0x89   :  { %v2051_v6 = vadd.s32 4294967169, %v291_v49 }
  0x8a   :  { %v1125_v37 = vadd.s32 1, %v2083_v34  ;;  %v1228_v39 = vadd.s32 1, %v2087_v36  ;;  %v2417_v15 = vshll.u32 %v1123_v57, 8 }
  0x8b   :  { %v297_v18 = vadd.s32 1, %v2051_v6 }
  0x8c   :  { %vm1126_vm0 = vcmp.gt.s32.totalorder %v1125_v37, 0  ;;  %vm1229_vm1 = vcmp.gt.s32.totalorder %v1228_v39, 0 }
  0x8d   :  { %v1127_v42 = vsel %vm1126_vm0, %v1125_v37, 0  ;;  %v1230_v44 = vsel %vm1229_vm1, %v1228_v39, 0  ;;  %vm298_vm8 = vcmp.gt.s32.totalorder %v297_v18, 0 }
  0x8e   :  { %v1129_v43 = vand.u32 31, %v1127_v42  ;;  %v2391_v46 = vshrl.u32 %v1127_v42, 5  ;;  %v1232_v62 = vand.u32 31, %v1230_v44  ;;  %v2440_v39 = vshrl.u32 %v1230_v44, 5 }
  0x90   :  { %v1130_v50 = vsub.s32 32, %v1129_v43  ;;  %v1132_v52 = vshll.u32 %v2245_v51, %v1129_v43  ;;  %v1135_v54 = vshll.u32 %v2246_v53, %v1129_v43  ;;  %v1138_v56 = vshll.u32 %v2247_v55, %v1129_v43 }
  0x91   :  { %v1141_v59 = vshll.u32 %v2248_v58, %v1129_v43  ;;  %v1144_v61 = vshll.u32 %v2249_v60, %v1129_v43  ;;  %vm1147_vm2 = vcmp.lt.s32.totalorder %v2391_v46, 1  ;;  %vm1150_vm3 = vcmp.lt.s32.totalorder %v2391_v46, 4 }
  0x92   :  { %v1133_v63 = vshrl.u32 %v2246_v53, %v1130_v50  ;;  %v1136_v0 = vshrl.u32 %v2247_v55, %v1130_v50  ;;  %v1139_v1 = vshrl.u32 %v2248_v58, %v1130_v50  ;;  %v1142_v3 = vshrl.u32 %v2249_v60, %v1130_v50 }
  0x93   :  { %v1145_v5 = vshrl.u32 %v2250_v4, %v1130_v50  ;;  %vm1149_vm4 = vcmp.lt.s32.totalorder %v2391_v46, 3  ;;  %v1233_v12 = vsub.s32 32, %v1232_v62  ;;  %vm1148_vm5 = vcmp.lt.s32.totalorder %v2391_v46, 2 }
  0x94   :  { %v1134_v7 = vor.u32 %v1133_v63, %v1132_v52  ;;  %v1137_v8 = vor.u32 %v1136_v0, %v1135_v54  ;;  %v1140_v9 = vor.u32 %v1139_v1, %v1138_v56  ;;  %v1143_v10 = vor.u32 %v1142_v3, %v1141_v59 }
  0x95   :  { %v1146_v11 = vor.u32 %v1145_v5, %v1144_v61  ;;  %v1235_v25 = vshll.u32 %v2245_v51, %v1232_v62  ;;  %v1238_v28 = vshll.u32 %v2246_v53, %v1232_v62  ;;  %v1236_v31 = vshrl.u32 %v2246_v53, %v1233_v12 }
  0x96   :  { %v1155_v13 = vsel %vm1147_vm2, %v1134_v7, %v1137_v8  ;;  %v1159_v14 = vsel %vm1147_vm2, %v1137_v8, %v1140_v9  ;;  %v1156_v16 = vsel %vm1150_vm3, %v1143_v10, 920167782  ;;  %v1239_v32 = vshrl.u32 %v2247_v55, %v1233_v12 }
  0x97   :  { %v1160_v17 = vsel %vm1150_vm3, %v1146_v11, 1326507024  ;;  %v1157_v21 = vsel %vm1149_vm4, %v1140_v9, %v1156_v16  ;;  %v1131_v34 = vshrl.u32 %v2245_v51, %v1130_v50  ;;  %v1241_v42 = vshll.u32 %v2247_v55, %v1232_v62 }
  0x98   :  { %v1161_v22 = vsel %vm1149_vm4, %v1143_v10, %v1160_v17  ;;  %v1158_v29 = vsel %vm1148_vm5, %v1155_v13, %v1157_v21  ;;  %v1242_v43 = vshrl.u32 %v2248_v58, %v1233_v12  ;;  %v1244_v49 = vshll.u32 %v2248_v58, %v1232_v62 }
  0x99   :  { %v1162_v30 = vsel %vm1148_vm5, %v1159_v14, %v1161_v22  ;;  %v2443_v40 = vmul.u32.u64.low %v2417_v15, %v1158_v29  ;;  %v2444_v41 = vmul.u32.u64.high %v2417_v15, %v1158_v29, %v2443_v40  ;;  %v1245_v52 = vshrl.u32 %v2249_v60, %v1233_v12 }
  0x9a   :  { %v2437_v36 = vmul.u32.u64.low %v2417_v15, %v1162_v30  ;;  %v2438_v37 = vmul.u32.u64.high %v2417_v15, %v1162_v30, %v2437_v36  ;;  %v1247_v50 = vshll.u32 %v2249_v60, %v1232_v62  ;;  %v1248_v54 = vshrl.u32 %v2250_v4, %v1233_v12 }
  0x9b   :  { %v1152_v44 = vsel %vm1150_vm3, %v1140_v9, 2102212464  ;;  %v2455_v56 = vor.u32 %v1236_v31, %v1235_v25  ;;  %v2457_v57 = vor.u32 %v1239_v32, %v1238_v28  ;;  %v1243_v59 = vor.u32 %v1242_v43, %v1241_v42 }
  0x9c   :  { %v1246_v61 = vor.u32 %v1245_v52, %v1244_v49  ;;  %vm1250_vm6 = vcmp.lt.s32.totalorder %v2440_v39, 1  ;;  %vm1252_vm7 = vcmp.lt.s32.totalorder %v2440_v39, 3  ;;  %v1249_v63 = vor.u32 %v1248_v54, %v1247_v50 }
  0x9d   :  { %vm1253_vm9 = vcmp.lt.s32.totalorder %v2440_v39, 4  ;;  %v294_v62 = vand.u32 8388607, %v287_v48  ;;  %v1151_v0 = vsel %vm1147_vm2, %v1131_v34, %v1134_v7  ;;  %v1153_v1 = vsel %vm1149_vm4, %v1137_v8, %v1152_v44 }
  0x9e   :  { %v1259_v3 = vsel %vm1253_vm9, %v1246_v61, 920167782  ;;  %vm1251_vm10 = vcmp.lt.s32.totalorder %v2440_v39, 2  ;;  %v1258_v5 = vsel %vm1250_vm6, %v2455_v56, %v2457_v57  ;;  %v299_v9 = vsel %vm298_vm8, %v297_v18, 0 }
  0x9f   :  { %v1260_v6 = vsel %vm1252_vm7, %v1243_v59, %v1259_v3  ;;  %v1263_v7 = vsel %vm1253_vm9, %v1249_v63, 1326507024  ;;  %v2055_v8 = vadd.s32 4294967169, %v395_v20  ;;  %v1154_v47 = vsel %vm1148_vm5, %v1151_v0, %v1153_v1 }
  0xa0   :  { %v1173_v10 = vadd.s32 1, %v2444_v41  ;;  %vm1172_vm11 = vc.u32 %v2438_v37, %v2443_v40  ;;  %v1261_v11 = vsel %vm1251_vm10, %v1258_v5, %v1260_v6  ;;  %v301_v13 = vand.u32 31, %v299_v9 }
  0xa1   :  { %v1262_v14 = vsel %vm1250_vm6, %v2457_v57, %v1243_v59  ;;  %v1264_v16 = vsel %vm1252_vm7, %v1246_v61, %v1263_v7  ;;  %v2492_v17 = vshll.u32 %v1226_v2, 8  ;;  %v295_v46 = vor.u32 8388608, %v294_v62 }
  0xa2   :  { %v1170_v18 = vmul.u32 %v2417_v15, %v1154_v47  ;;  %v1234_v20 = vshrl.u32 %v2245_v51, %v1233_v12  ;;  %v302_v21 = vsub.s32 32, %v301_v13  ;;  %v401_v22 = vadd.s32 1, %v2055_v8 }
  0xa3   :  { %v1174_v25 = vsel %vm1172_vm11, %v1173_v10, %v2444_v41  ;;  %v2498_v28 = vmul.u32.u64.low %v2492_v17, %v1261_v11  ;;  %v2499_v29 = vmul.u32.u64.high %v2492_v17, %v1261_v11, %v2498_v28  ;;  %v300_v30 = vshrl.u32 %v299_v9, 5 }
  0xa4   :  { %v1265_v31 = vsel %vm1251_vm10, %v1262_v14, %v1264_v16  ;;  %v304_v32 = vshll.u32 %v2245_v51, %v301_v13  ;;  %v305_v34 = vshrl.u32 %v2246_v53, %v302_v21  ;;  %v307_v15 = vshll.u32 %v2246_v53, %v301_v13 }
  0xa5   :  { %v308_v12 = vshrl.u32 %v2247_v55, %v302_v21  ;;  %v310_v36 = vshll.u32 %v2247_v55, %v301_v13  ;;  %v311_v41 = vshrl.u32 %v2248_v58, %v302_v21  ;;  %v313_v42 = vshll.u32 %v2248_v58, %v301_v13 }
  0xa6   :  { %v306_v43 = vor.u32 %v305_v34, %v304_v32  ;;  %v314_v49 = vshrl.u32 %v2249_v60, %v302_v21  ;;  %v316_v52 = vshll.u32 %v2249_v60, %v301_v13  ;;  %v317_v50 = vshrl.u32 %v2250_v4, %v302_v21 }
  0xa7   :  { %v2515_v54 = vmul.u32.u64.low %v2492_v17, %v1265_v31  ;;  %v2516_v44 = vmul.u32.u64.high %v2492_v17, %v1265_v31, %v2515_v54  ;;  %v309_v61 = vor.u32 %v308_v12, %v307_v15  ;;  %v312_v63 = vor.u32 %v311_v41, %v310_v36 }
  0xa8   :  { %v1175_v62 = vadd.s32 %v1174_v25, %v1170_v18  ;;  %v315_v0 = vor.u32 %v314_v49, %v313_v42  ;;  %v318_v1 = vor.u32 %v317_v50, %v316_v52  ;;  %vm319_vm12 = vcmp.lt.s32.totalorder %v300_v30, 1  ;;  %v43_v52 = vpop.permute.xlu0 %42 }
  0xa9   :  { %v1255_v2 = vsel %vm1253_vm9, %v1243_v59, 2102212464  ;;  %vm322_vm13 = vcmp.lt.s32.totalorder %v300_v30, 4  ;;  %v327_v3 = vsel %vm319_vm12, %v306_v43, %v309_v61  ;;  %v331_v5 = vsel %vm319_vm12, %v309_v61, %v312_v63 }
  0xaa   :  { %vm321_vm14 = vcmp.lt.s32.totalorder %v300_v30, 3  ;;  %v328_v6 = vsel %vm322_vm13, %v315_v0, 920167782  ;;  %v332_v9 = vsel %vm322_vm13, %v318_v1, 1326507024  ;;  %v335_v7 = vshll.u32 %v295_v46, 8 }
  0xab   :  { %v1254_v8 = vsel %vm1250_vm6, %v1234_v20, %v2455_v56  ;;  %vm320_vm15 = vcmp.lt.s32.totalorder %v300_v30, 2  ;;  %v329_v47 = vsel %vm321_vm14, %v312_v63, %v328_v6  ;;  %v333_v59 = vsel %vm321_vm14, %v315_v0, %v332_v9 }
  0xac   :  { %v1176_v10 = vadd.s32 536870912, %v1175_v62  ;;  %v1256_v11 = vsel %vm1252_vm7, %v2457_v57, %v1255_v2  ;;  %v330_v13 = vsel %vm320_vm15, %v327_v3, %v329_v47  ;;  %v334_v14 = vsel %vm320_vm15, %v331_v5, %v333_v59 }
  0xad   :  { %v324_v16 = vsel %vm322_vm13, %v312_v63, 2102212464  ;;  %v2535_v46 = vmul.u32.u64.low %v335_v7, %v334_v14  ;;  %v2536_v18 = vmul.u32.u64.high %v335_v7, %v334_v14, %v2535_v46  ;;  %vm402_vm0 = vcmp.gt.s32.totalorder %v401_v22, 0 }
  0xae   :  { %v303_v56 = vshrl.u32 %v2245_v51, %v302_v21  ;;  %v2539_v20 = vmul.u32.u64.low %v335_v7, %v330_v13  ;;  %v2540_v25 = vmul.u32.u64.high %v335_v7, %v330_v13, %v2539_v20  ;;  %v403_v31 = vsel %vm402_vm0, %v401_v22, 0 }
  0xaf   :  { %v1276_v32 = vadd.s32 1, %v2499_v29  ;;  %v405_v57 = vand.u32 31, %v403_v31  ;;  %vm1275_vm1 = vc.u32 %v2516_v44, %v2498_v28  ;;  %v325_v15 = vsel %vm321_vm14, %v309_v61, %v324_v16 }
  0xb0   :  { %v323_v34 = vsel %vm319_vm12, %v303_v56, %v306_v43  ;;  %v2548_v12 = vshrl.u32 %v1176_v10, 30  ;;  %v1257_v21 = vsel %vm1251_vm10, %v1254_v8, %v1256_v11  ;;  %v391_v36 = vand.u32 2147483647, %v2389_v45 }
  0xb1   :  { %vm344_vm2 = vc.u32 %v2536_v18, %v2539_v20  ;;  %v345_v22 = vadd.s32 1, %v2540_v25  ;;  %v406_v41 = vsub.s32 32, %v405_v57  ;;  %v1277_v42 = vsel %vm1275_vm1, %v1276_v32, %v2499_v29 }
  0xb2   :  { %v326_v49 = vsel %vm320_vm15, %v323_v34, %v325_v15  ;;  %v1273_v43 = vmul.u32 %v2492_v17, %v1257_v21  ;;  %v1178_v50 = vshll.u32 %v2548_v12, 30  ;;  %v398_v54 = vand.u32 8388607, %v391_v36 }
  0xb3   :  { %v346_v39 = vsel %vm344_vm2, %v345_v22, %v2540_v25  ;;  %v342_v63 = vmul.u32 %v335_v7, %v326_v49  ;;  %v409_v0 = vshrl.u32 %v2246_v53, %v406_v41  ;;  %v412_v1 = vshrl.u32 %v2247_v55, %v406_v41 }
  0xb4   :  { %v2563_v61 = vadd.s32 %v1277_v42, %v1273_v43  ;;  %v415_v29 = vshrl.u32 %v2248_v58, %v406_v41  ;;  %v2569_v30 = vmul.f32 %v2368_v23, %v43_v52  ;;  %v408_v2 = vshll.u32 %v2245_v51, %v405_v57 }
  0xb5   :  { %v347_v17 = vadd.s32 %v346_v39, %v342_v63  ;;  %v418_v3 = vshrl.u32 %v2249_v60, %v406_v41  ;;  %v2574_v5 = vmul.f32 %v2370_v24, %v43_v52  ;;  %v2576_v6 = vsub.s32 %v1175_v62, %v1178_v50 }
  0xb6   :  { %v399_v9 = vor.u32 8388608, %v398_v54  ;;  %v411_v7 = vshll.u32 %v2246_v53, %v405_v57  ;;  %v414_v8 = vshll.u32 %v2247_v55, %v405_v57  ;;  %v1279_v47 = vadd.s32 536870912, %v2563_v61 }
  0xb7   :  { %v404_v59 = vshrl.u32 %v403_v31, 5  ;;  %v410_v23 = vor.u32 %v409_v0, %v408_v2  ;;  %v417_v10 = vshll.u32 %v2248_v58, %v405_v57  ;;  %v420_v14 = vshll.u32 %v2249_v60, %v405_v57 }
  0xb8   :  { %v413_v11 = vor.u32 %v412_v1, %v411_v7  ;;  %v416_v13 = vor.u32 %v415_v29, %v414_v8  ;;  %v421_v24 = vshrl.u32 %v2250_v4, %v406_v41  ;;  %v348_v16 = vadd.s32 536870912, %v347_v17 }
  0xb9   :  { %v419_v62 = vor.u32 %v418_v3, %v417_v10  ;;  %v1181_v46 = vsub.s32 0, %v2576_v6  ;;  %v2585_v25 = vshrl.u32 %v1279_v47, 30  ;;  %vm423_vm3 = vcmp.lt.s32.totalorder %v404_v59, 1 }
  0xba   :  { %v422_v56 = vor.u32 %v421_v24, %v420_v14  ;;  %vm426_vm4 = vcmp.lt.s32.totalorder %v404_v59, 4  ;;  %v439_v32 = vshll.u32 %v399_v9, 8  ;;  %v431_v34 = vsel %vm423_vm3, %v410_v23, %v413_v11 }
  0xbb   :  { %v428_v31 = vsel %vm426_vm4, %v416_v13, 2102212464  ;;  %v82_v15 = vand.u32 2139095040, %v2569_v30  ;;  %v186_v21 = vand.u32 2139095040, %v2574_v5  ;;  %v2589_v22 = vshrl.u32 %v348_v16, 30 }
  0xbc   :  { %v407_v57 = vshrl.u32 %v2245_v51, %v406_v41  ;;  %vm425_vm5 = vcmp.lt.s32.totalorder %v404_v59, 3  ;;  %v432_v42 = vsel %vm426_vm4, %v419_v62, 920167782  ;;  %vm424_vm6 = vcmp.lt.s32.totalorder %v404_v59, 2 }
  0xbd   :  { %v433_v49 = vsel %vm425_vm5, %v416_v13, %v432_v42  ;;  %v435_v43 = vsel %vm423_vm3, %v413_v11, %v416_v13  ;;  %v436_v52 = vsel %vm426_vm4, %v422_v56, 1326507024  ;;  %v429_v39 = vsel %vm425_vm5, %v413_v11, %v428_v31 }
  0xbe   :  { %v427_v50 = vsel %vm423_vm3, %v407_v57, %v410_v23  ;;  %v434_v54 = vsel %vm424_vm6, %v431_v34, %v433_v49  ;;  %v437_v63 = vsel %vm425_vm5, %v419_v62, %v436_v52  ;;  %v2084_v0 = vmin.u32 %v1181_v46, %v2576_v6 }
  0xbf   :  { %v438_v1 = vsel %vm424_vm6, %v435_v43, %v437_v63  ;;  %v2593_v29 = vmul.u32.u64.low %v439_v32, %v434_v54  ;;  %v2594_v2 = vmul.u32.u64.high %v439_v32, %v434_v54, %v2593_v29  ;;  %v350_v41 = vshll.u32 %v2589_v22, 30 }
  0xc0   :  { %v2597_v3 = vmul.u32.u64.low %v439_v32, %v438_v1  ;;  %v2598_v9 = vmul.u32.u64.high %v439_v32, %v438_v1, %v2597_v3  ;;  %v430_v7 = vsel %vm424_vm6, %v427_v50, %v429_v39  ;;  %v83_v8 = vshrl.u32 %v82_v15, 23 }
  0xc1   :  { %v187_v47 = vshrl.u32 %v186_v21, 23  ;;  %v1281_v59 = vshll.u32 %v2585_v25, 30  ;;  %v1183_v23 = vclz %v2084_v0  ;;  %v449_v10 = vadd.s32 1, %v2594_v2 }
  0xc2   :  { %v446_v13 = vmul.u32 %v439_v32, %v430_v7  ;;  %vm448_vm7 = vc.u32 %v2598_v9, %v2593_v29  ;;  %v2605_v14 = vsub.s32 %v347_v17, %v350_v41  ;;  %v2043_v16 = vadd.s32 4294967169, %v83_v8 }
  0xc3   :  { %v2047_v11 = vadd.s32 4294967169, %v187_v47  ;;  %v450_v24 = vsel %vm448_vm7, %v449_v10, %v2594_v2  ;;  %v2609_v62 = vsub.s32 %v2563_v61, %v1281_v59  ;;  %v2085_v31 = vadd.s32 4294967294, %v1183_v23 }
  0xc4   :  { %v451_v46 = vadd.s32 %v450_v24, %v446_v13  ;;  %v353_v15 = vsub.s32 0, %v2605_v14  ;;  %v89_v21 = vadd.s32 1, %v2043_v16  ;;  %v183_v52 = vand.u32 2147483647, %v2574_v5 }
  0xc5   :  { %v193_v56 = vadd.s32 1, %v2047_v11  ;;  %v1284_v57 = vsub.s32 0, %v2609_v62  ;;  %vm2086_vm9 = vcmp.lt.s32.totalorder %v2085_v31, 0 }
  0xc6   :  { %v452_v34 = vadd.s32 536870912, %v451_v46  ;;  %v2052_v61 = vmin.u32 %v353_v15, %v2605_v14  ;;  %vm90_vm10 = vcmp.gt.s32.totalorder %v89_v21, 0  ;;  %v2618_v50 = vsel %vm2086_vm9, 0, %v2085_v31 }
  0xc7   :  { %vm194_vm8 = vcmp.gt.s32.totalorder %v193_v56, 0  ;;  %v2088_v39 = vmin.u32 %v1284_v57, %v2609_v62  ;;  %v91_v41 = vsel %vm90_vm10, %v89_v21, 0  ;;  %v1187_v8 = vsub.s32 32, %v2618_v50 }
  0xc8   :  { %v195_v32 = vsel %vm194_vm8, %v193_v56, 0  ;;  %v2613_v42 = vshrl.u32 %v452_v34, 30  ;;  %v355_v47 = vclz %v2052_v61  ;;  %v190_v23 = vand.u32 8388607, %v183_v52 }
  0xc9   :  { %v197_v17 = vand.u32 31, %v195_v32  ;;  %v2623_v63 = vshrl.u32 %v195_v32, 5  ;;  %v1191_v16 = vsub.s32 4294967266, %v2618_v50  ;;  %v2637_v56 = vand.u32 31, %v91_v41 }
  0xca   :  { %v454_v49 = vshll.u32 %v2613_v42, 30  ;;  %v2053_v32 = vadd.s32 4294967294, %v355_v47  ;;  %vm393_vm8 = vcmp.lt.s32.totalorder %v2389_v45, 0  ;;  %vm2792_vm10 = vcmp.le.f32.partialorder %v391_v36, 0.7853982 }
  0xcb   :  { %v198_v43 = vsub.s32 32, %v197_v17  ;;  %v212_v1 = vshll.u32 %v2249_v60, %v197_v17  ;;  %v209_v7 = vshll.u32 %v2248_v58, %v197_v17  ;;  %v200_v13 = vshll.u32 %v2245_v51, %v197_v17 }
  0xcc   :  { %v2621_v54 = vsub.s32 %v451_v46, %v454_v49  ;;  %v1286_v46 = vclz %v2088_v39  ;;  %vm218_vm11 = vcmp.lt.s32.totalorder %v2623_v63, 4  ;;  %v203_v15 = vshll.u32 %v2246_v53, %v197_v17 }
  0xcd   :  { %v210_v0 = vshrl.u32 %v2249_v60, %v198_v43  ;;  %v213_v2 = vshrl.u32 %v2250_v4, %v198_v43  ;;  %v201_v24 = vshrl.u32 %v2246_v53, %v198_v43  ;;  %v204_v21 = vshrl.u32 %v2247_v55, %v198_v43 }
  0xce   :  { %v457_v3 = vsub.s32 0, %v2621_v54  ;;  %v206_v49 = vshll.u32 %v2247_v55, %v197_v17  ;;  %v207_v61 = vshrl.u32 %v2248_v58, %v198_v43  ;;  %vm215_vm12 = vcmp.lt.s32.totalorder %v2623_v63, 1 }
  0xcf   :  { %v214_v59 = vor.u32 %v213_v2, %v212_v1  ;;  %v211_v11 = vor.u32 %v210_v0, %v209_v7  ;;  %v202_v34 = vor.u32 %v201_v24, %v200_v13  ;;  %v191_v1 = vor.u32 8388608, %v190_v23 }
  0xd0   :  { %v2056_v10 = vmin.u32 %v457_v3, %v2621_v54  ;;  %v205_v2 = vor.u32 %v204_v21, %v203_v15  ;;  %v2649_v3 = vsub.s32 32, %v2637_v56  ;;  %v208_v7 = vor.u32 %v207_v61, %v206_v49 }
  0xd1   :  { %v228_v57 = vsel %vm218_vm11, %v214_v59, 1326507024  ;;  %v224_v39 = vsel %vm218_vm11, %v211_v11, 920167782  ;;  %vm217_vm13 = vcmp.lt.s32.totalorder %v2623_v63, 3  ;;  %v199_v47 = vshrl.u32 %v2245_v51, %v198_v43 }
  0xd2   :  { %v459_v31 = vclz %v2056_v10  ;;  %v223_v17 = vsel %vm215_vm12, %v202_v34, %v205_v2  ;;  %v229_v59 = vsel %vm217_vm13, %v211_v11, %v228_v57  ;;  %v220_v23 = vsel %vm218_vm11, %v208_v7, 2102212464 }
  0xd3   :  { %v225_v13 = vsel %vm217_vm13, %v208_v7, %v224_v39  ;;  %v227_v24 = vsel %vm215_vm12, %v205_v2, %v208_v7  ;;  %vm216_vm15 = vcmp.lt.s32.totalorder %v2623_v63, 2  ;;  %v231_v21 = vshll.u32 %v191_v1, 8 }
  0xd4   :  { %v2057_v0 = vadd.s32 4294967294, %v459_v31  ;;  %v2660_v31 = vadd.s32 4294967294, %v1286_v46  ;;  %vm2054_vm0 = vcmp.lt.s32.totalorder %v2053_v32, 0  ;;  %v219_v43 = vsel %vm215_vm12, %v199_v47, %v202_v34 }
  0xd5   :  { %v226_v49 = vsel %vm216_vm15, %v223_v17, %v225_v13  ;;  %v230_v11 = vsel %vm216_vm15, %v227_v24, %v229_v59  ;;  %v221_v61 = vsel %vm217_vm13, %v205_v2, %v220_v23  ;;  %v106_v46 = vshrl.u32 %v2249_v60, %v2649_v3 }
  0xd6   :  { %vm2058_vm14 = vcmp.lt.s32.totalorder %v2057_v0, 0  ;;  %v109_v1 = vshrl.u32 %v2250_v4, %v2649_v3  ;;  %v2676_v34 = vmul.u32.u64.low %v231_v21, %v226_v49  ;;  %v2677_v7 = vmul.u32.u64.high %v231_v21, %v226_v49, %v2676_v34 }
  0xd7   :  { %v462_v10 = vsel %vm2058_vm14, 0, %v2057_v0  ;;  %v2669_v0 = vmul.u32.u64.low %v231_v21, %v230_v11  ;;  %v2670_v39 = vmul.u32.u64.high %v231_v21, %v230_v11, %v2669_v0  ;;  %v2680_v47 = vadd.s32 127, %v1191_v16 }
  0xd8   :  { %v467_v15 = vsub.s32 4294967266, %v462_v10  ;;  %v2684_v17 = vadd.s32 %v2539_v20, %v2536_v18  ;;  %v463_v2 = vsub.s32 32, %v462_v10  ;;  %v79_v59 = vand.u32 2147483647, %v2569_v30 }
  0xd9   :  { %v2687_v23 = vshrl.u32 %v91_v41, 5  ;;  %v105_v13 = vshll.u32 %v2248_v58, %v2637_v56  ;;  %v108_v4 = vshll.u32 %v2249_v60, %v2637_v56  ;;  %v222_v24 = vsel %vm216_vm15, %v219_v43, %v221_v61 }
  0xda   :  { %v468_v57 = vadd.s32 127, %v467_v15  ;;  %v2696_v16 = vsel %vm2054_vm0, 0, %v2053_v32  ;;  %v447_v18 = vadd.s32 %v2593_v29, %v2598_v9  ;;  %vm240_vm1 = vc.u32 %v2670_v39, %v2676_v34 }
  0xdb   :  { %vm2090_vm2 = vcmp.lt.s32.totalorder %v2660_v31, 0  ;;  %v107_v41 = vor.u32 %v106_v46, %v105_v13  ;;  %v110_v15 = vor.u32 %v109_v1, %v108_v4  ;;  %v241_v49 = vadd.s32 1, %v2677_v7 }
  0xdc   :  { %v469_v20 = vshll.u32 %v468_v57, 23  ;;  %v465_v60 = vshrl.u32 %v447_v18, %v463_v2  ;;  %v238_v11 = vmul.u32 %v231_v21, %v222_v24  ;;  %v96_v63 = vshll.u32 %v2245_v51, %v2637_v56 }
  0xdd   :  { %v97_v32 = vshrl.u32 %v2246_v53, %v2649_v3  ;;  %v363_v29 = vsub.s32 4294967266, %v2696_v16  ;;  %vm114_vm3 = vcmp.lt.s32.totalorder %v2687_v23, 4  ;;  %v242_v9 = vsel %vm240_vm1, %v241_v49, %v2677_v7 }
  0xde   :  { %v86_v43 = vand.u32 8388607, %v79_v59  ;;  %v464_v57 = vshll.u32 %v2621_v54, %v462_v10  ;;  %v470_v61 = vor.u32 4788187, %v469_v20  ;;  %v243_v0 = vadd.s32 %v242_v9, %v238_v11 }
  0xdf   :  { %v98_v21 = vor.u32 %v97_v32, %v96_v63  ;;  %v99_v46 = vshll.u32 %v2246_v53, %v2637_v56  ;;  %v100_v1 = vshrl.u32 %v2247_v55, %v2649_v3  ;;  %v102_v2 = vshll.u32 %v2247_v55, %v2637_v56 }
  0xe0   :  { %v103_v7 = vshrl.u32 %v2248_v58, %v2649_v3  ;;  %v466_v13 = vor.u32 %v465_v60, %v464_v57  ;;  %v120_v4 = vsel %vm114_vm3, %v107_v41, 920167782  ;;  %v124_v54 = vsel %vm114_vm3, %v110_v15, 1326507024 }
  0xe1   :  { %v244_v10 = vadd.s32 536870912, %v243_v0  ;;  %v359_v24 = vsub.s32 32, %v2696_v16  ;;  %v87_v53 = vor.u32 8388608, %v86_v43  ;;  %v101_v18 = vor.u32 %v100_v1, %v99_v46 }
  0xe2   :  { %v104_v20 = vor.u32 %v103_v7, %v102_v2  ;;  %v364_v49 = vadd.s32 127, %v363_v29  ;;  %vm111_vm4 = vcmp.lt.s32.totalorder %v2687_v23, 1  ;;  %vm113_vm5 = vcmp.lt.s32.totalorder %v2687_v23, 3 }
  0xe3   :  { %v2727_v11 = vshrl.u32 %v244_v10, 30  ;;  %v471_v55 = vand.u32 2147483647, %v470_v61  ;;  %v119_v58 = vsel %vm111_vm4, %v98_v21, %v101_v18  ;;  %v125_v15 = vsel %vm113_vm5, %v107_v41, %v124_v54 }
  0xe4   :  { %v121_v56 = vsel %vm113_vm5, %v104_v20, %v120_v4  ;;  %v473_v60 = vcvt.s32.f32 %v466_v13  ;;  %v95_v32 = vshrl.u32 %v2245_v51, %v2649_v3  ;;  %vm112_vm6 = vcmp.lt.s32.totalorder %v2687_v23, 2 }
  0xe5   :  { %v246_v63 = vshll.u32 %v2727_v11, 30  ;;  %v116_v29 = vsel %vm114_vm3, %v104_v20, 2102212464  ;;  %v122_v9 = vsel %vm112_vm6, %v119_v58, %v121_v56  ;;  %v123_v43 = vsel %vm111_vm4, %v101_v18, %v104_v20 }
  0xe6   :  { %v127_v57 = vshll.u32 %v87_v53, 8  ;;  %v2750_v41 = vsel %vm2090_vm2, 0, %v2660_v31  ;;  %v365_v61 = vshll.u32 %v364_v49, 23  ;;  %v126_v51 = vsel %vm112_vm6, %v123_v43, %v125_v15 }
  0xe7   :  { %v247_v46 = vsub.s32 %v243_v0, %v246_v63  ;;  %v474_v3 = vmul.f32 %v473_v60, %v471_v55  ;;  %v115_v1 = vsel %vm111_vm4, %v95_v32, %v98_v21  ;;  %v117_v4 = vsel %vm113_vm5, %v101_v18, %v116_v29 }
  0xe8   :  { %v2756_v2 = vmul.u32.u64.low %v127_v57, %v126_v51  ;;  %v2757_v7 = vmul.u32.u64.high %v127_v57, %v126_v51, %v2756_v2  ;;  %v2761_v54 = vmul.u32.u64.low %v127_v57, %v122_v9  ;;  %v2762_v10 = vmul.u32.u64.high %v127_v57, %v122_v9, %v2761_v54 }
  0xe9   :  { %v249_v13 = vsub.s32 0, %v247_v46  ;;  %v1193_v31 = vshll.u32 %v2680_v47, 23  ;;  %v361_v0 = vshrl.u32 %v2684_v17, %v359_v24  ;;  %v1171_v53 = vadd.s32 %v2443_v40, %v2438_v37 }
  0xea   :  { %v1294_v21 = vsub.s32 4294967266, %v2750_v41  ;;  %v360_v49 = vshll.u32 %v2605_v14, %v2696_v16  ;;  %v366_v55 = vor.u32 4788187, %v365_v61  ;;  %v118_v18 = vsel %vm112_vm6, %v115_v1, %v117_v4 }
  0xeb   :  { %v2048_v20 = vmin.u32 %v249_v13, %v247_v46  ;;  %v1189_v58 = vshrl.u32 %v1171_v53, %v1187_v8  ;;  %v475_v56 = vxor.u32 2147483648, %v474_v3  ;;  %vm136_vm7 = vc.u32 %v2757_v7, %v2761_v54 }
  0xec   :  { %v1194_v17 = vor.u32 4788187, %v1193_v31  ;;  %v362_v37 = vor.u32 %v361_v0, %v360_v49  ;;  %v137_v40 = vadd.s32 1, %v2762_v10  ;;  %v1188_v24 = vshll.u32 %v2576_v6, %v2618_v50 }
  0xed   :  { %v251_v47 = vclz %v2048_v20  ;;  %v134_v23 = vmul.u32 %v127_v57, %v118_v18  ;;  %v1274_v16 = vadd.s32 %v2498_v28, %v2516_v44  ;;  %v1295_v8 = vadd.s32 127, %v1294_v21 }
  0xee   :  { %v367_v15 = vand.u32 2147483647, %v366_v55  ;;  %v138_v60 = vsel %vm136_vm7, %v137_v40, %v2762_v10  ;;  %v1190_v63 = vor.u32 %v1189_v58, %v1188_v24  ;;  %v476_v32 = vsel %vm393_vm8, %v475_v56, %v474_v3 }
  0xef   :  { %v2049_v14 = vadd.s32 4294967294, %v251_v47  ;;  %v139_v29 = vadd.s32 %v138_v60, %v134_v23  ;;  %v1195_v9 = vand.u32 2147483647, %v1194_v17  ;;  %v1290_v6 = vsub.s32 32, %v2750_v41 }
  0xf0   :  { %v369_v50 = vcvt.s32.f32 %v362_v37  ;;  %v239_v57 = vadd.s32 %v2676_v34, %v2670_v39  ;;  %v1296_v51 = vshll.u32 %v1295_v8, 23  ;;  %v479_v1 = vsel %vm2792_vm10, %v2389_v45, %v476_v32 }
  0xf1   :  { %vm2050_vm9 = vcmp.lt.s32.totalorder %v2049_v14, 0  ;;  %v140_v2 = vadd.s32 536870912, %v139_v29  ;;  %v477_v39 = vsub.s32 4, %v2613_v42  ;;  %v1197_v34 = vcvt.s32.f32 %v1190_v63 }
  0xf2   :  { %v254_v43 = vsel %vm2050_vm9, 0, %v2049_v14  ;;  %v370_v3 = vmul.f32 %v369_v50, %v367_v15  ;;  %v1292_v31 = vshrl.u32 %v1274_v16, %v1290_v6  ;;  %v1291_v36 = vshll.u32 %v2609_v62, %v2750_v41 }
  0xf3   :  { %v255_v61 = vsub.s32 32, %v254_v43  ;;  %v259_v28 = vsub.s32 4294967266, %v254_v43  ;;  %v256_v13 = vshll.u32 %v247_v46, %v254_v43  ;;  %v2800_v0 = vshrl.u32 %v140_v2, 30 }
  0xf4   :  { %2172 = vcosq.f32 %v479_v1  ;;  %v1297_v21 = vor.u32 4788187, %v1296_v51  ;;  %v371_v49 = vxor.u32 2147483648, %v370_v3  ;;  %v1198_v46 = vmul.f32 %v1197_v34, %v1195_v9 }
  0xf5   :  { %v257_v4 = vshrl.u32 %v239_v57, %v255_v61  ;;  %v260_v10 = vadd.s32 127, %v259_v28  ;;  %2174 = vsinq.f32 %v479_v1  ;;  %v142_v55 = vshll.u32 %v2800_v0, 30 }
  0xf6   :  { %v478_v58 = vsel %vm393_vm8, %v477_v39, %v2613_v42  ;;  %v1293_v56 = vor.u32 %v1292_v31, %v1291_v36  ;;  %v269_v47 = vsub.s32 4, %v2727_v11  ;;  %vm289_vm11 = vcmp.lt.s32.totalorder %v2381_v33, 0 }
  0xf7   :  { %v258_v53 = vor.u32 %v257_v4, %v256_v13  ;;  %v261_v20 = vshll.u32 %v260_v10, 23  ;;  %v2809_v17 = vsub.s32 %v139_v29, %v142_v55  ;;  %v1298_v37 = vand.u32 2147483647, %v1297_v21 }
  0xf8   :  { %v372_v40 = vsel %vm289_vm11, %v371_v49, %v370_v3  ;;  %v480_v24 = vsel %vm2792_vm10, 0, %v478_v58  ;;  %v1199_v23 = vxor.u32 2147483648, %v1198_v46  ;;  %vm185_vm12 = vcmp.lt.s32.totalorder %v2574_v5, 0 }
  0xf9   :  { %v262_v18 = vor.u32 4788187, %v261_v20  ;;  %v265_v41 = vcvt.s32.f32 %v258_v53  ;;  %v145_v14 = vsub.s32 0, %v2809_v17  ;;  %v1300_v16 = vcvt.s32.f32 %v1293_v56 }
  0xfa   :  { %vm2820_vm13 = vcmp.le.f32.partialorder %v287_v48, 0.7853982  ;;  %v270_v15 = vsel %vm185_vm12, %v269_v47, %v2727_v11  ;;  %v484_v29 = vadd.s32 3, %v480_v24  ;;  %vm1117_vm14 = vcmp.lt.s32.totalorder %v2373_v26, 0 }
  0xfb   :  { %v263_v62 = vand.u32 2147483647, %v262_v18  ;;  %v2044_v60 = vmin.u32 %v145_v14, %v2809_v17  ;;  %v375_v63 = vsel %vm2820_vm13, %v2381_v33, %v372_v40  ;;  %v1301_v9 = vmul.f32 %v1300_v16, %v1298_v37 }
  0xfc   :  { %vm2834_vm15 = vcmp.le.f32.partialorder %v183_v52, 0.7853982  ;;  %v2840_v11 = vsel %vm1117_vm14, %v1199_v23, %v1198_v46  ;;  %v2843_v43 = vadd.s32 8, %v2361_v19  ;;  %vm1220_vm0 = vcmp.lt.s32.totalorder %v2376_v27, 0 }
  0xfd   :  { %v266_v42 = vmul.f32 %v265_v41, %v263_v62  ;;  %v147_v6 = vclz %v2044_v60  ;;  %v272_v61 = vsel %vm2834_vm15, 0, %v270_v15  ;;  %2176 = vcosq.f32 %v375_v63 }
  0xfe   :  { %v2173_v50 = vpop.eup %2172  ;;  %v1105_v44 = vand.u32 3, %v480_v24  ;;  %v485_v3 = vand.u32 3, %v484_v29  ;;  %v373_v19 = vsub.s32 4, %v2589_v22  ;;  %v1302_v1 = vxor.u32 2147483648, %v1301_v9 }
  0xff   :  { %v267_v32 = vxor.u32 2147483648, %v266_v42  ;;  %v2175_v28 = vpop.eup %2174  ;;  %v2045_v51 = vadd.s32 4294967294, %v147_v6  ;;  %v276_v2 = vadd.s32 3, %v272_v61  ;;  %v2251_v13 = vmov 0.0   ;;  %v1330_v6 = vld [vmem:[%s3127_s2 + $0x18] sm:$0xff] }
 0x100   :  { %1439 = vmatprep.mubr.f32.mxu0 %v2251_v13  ;;  %1632 = vmatprep.mubr.f32.mxu1 %v2251_v13  ;;  %v488_v4 = vxor.u32 2147483648, %v2175_v28  ;;  %v491_v10 = vxor.u32 2147483648, %v2173_v50  ;;  %vm1107_vm2 = vcmp.eq.s32.totalorder %v1105_v44, 0  ;;  %v135_v34 = vadd.s32 %v2761_v54, %v2757_v7 }
 0x101   :  { %v268_v57 = vsel %vm185_vm12, %v267_v32, %v266_v42  ;;  %vm2046_vm1 = vcmp.lt.s32.totalorder %v2045_v51, 0  ;;  %vm487_vm3 = vcmp.eq.s32.totalorder %v485_v3, 0  ;;  %vm490_vm4 = vcmp.eq.s32.totalorder %v485_v3, 2 }
 0x102   :  { %v271_v52 = vsel %vm2834_vm15, %v2574_v5, %v268_v57  ;;  %v150_v39 = vsel %vm2046_vm1, 0, %v2045_v51  ;;  %vm1110_vm5 = vcmp.eq.s32.totalorder %v1105_v44, 2  ;;  %v374_v53 = vsel %vm289_vm11, %v373_v19, %v2589_v22 }
 0x103   :  { %2178 = vcosq.f32 %v271_v52  ;;  %v151_v31 = vsub.s32 32, %v150_v39  ;;  %v155_v36 = vsub.s32 4294967266, %v150_v39  ;;  %vm77_vm6 = vcmp.lt.s32.totalorder %v2843_v43, 10  ;;  %v1327_v43 = vld [vmem:[%s3127_s2] sm:$0xff] }
 0x104   :  { %2180 = vsinq.f32 %v271_v52  ;;  %v277_v20 = vand.u32 3, %v276_v2  ;;  %v152_v21 = vshll.u32 %v2809_v17, %v150_v39  ;;  %v489_v46 = vsel %vm487_vm3, %v2173_v50, %v488_v4 }
 0x105   :  { %2182 = vsinq.f32 %v375_v63  ;;  %v153_v49 = vshrl.u32 %v135_v34, %v151_v31  ;;  %v156_v55 = vadd.s32 127, %v155_v36  ;;  %v492_v18 = vsel %vm490_vm4, %v491_v10, %v2175_v28 }
 0x106   :  { %v1109_v58 = vsel %vm1107_vm2, %v2173_v50, %v488_v4  ;;  %v1112_v7 = vsel %vm1110_vm5, %v491_v10, %v2175_v28  ;;  %vm275_vm7 = vweird.f32 %v2574_v5  ;;  %v376_v47 = vsel %vm2820_vm13, 0, %v374_v53 }
 0x107   :  { %v154_v54 = vor.u32 %v153_v49, %v152_v21  ;;  %v157_v56 = vshll.u32 %v156_v55, 23  ;;  %v1303_v22 = vsel %vm1220_vm0, %v1302_v1, %v1301_v9  ;;  %vm483_vm8 = vweird.f32 %v2389_v45  ;;  %v2177_v17 = vpop.eup %2176 }
 0x108   :  { %vm486_vm9 = vcmp.lt.s32.totalorder %v485_v3, 2  ;;  %vm1106_vm10 = vcmp.lt.s32.totalorder %v1105_v44, 2  ;;  %vm2871_vm11 = vcmp.le.f32.partialorder %v79_v59, 0.7853982  ;;  %vm279_vm12 = vcmp.eq.s32.totalorder %v277_v20, 0 }
 0x109   :  { %v493_v62 = vsel %vm486_vm9, %v489_v46, %v492_v18  ;;  %v1113_v41 = vsel %vm1106_vm10, %v1109_v58, %v1112_v7  ;;  %v158_v40 = vor.u32 4788187, %v157_v56  ;;  %vm81_vm13 = vcmp.lt.s32.totalorder %v2569_v30, 0 }
 0x10a   :  { %v380_v14 = vadd.s32 3, %v376_v47  ;;  %vm2878_vm15 = vcmp.le.f32.partialorder %v1218_v38, 0.7853982  ;;  %v161_v15 = vcvt.s32.f32 %v154_v54  ;;  %vm282_vm1 = vcmp.eq.s32.totalorder %v277_v20, 2 }
 0x10b   :  { %v159_v8 = vand.u32 2147483647, %v158_v40  ;;  %v1306_v59 = vsel %vm2878_vm15, %v2376_v27, %v1303_v22  ;;  %v494_v32 = vsel %vm483_vm8, nan, %v493_v62  ;;  %v1114_v38 = vsel %vm483_vm8, nan, %v1113_v41 }
 0x10c   :  { %v165_v48 = vsub.s32 4, %v2800_v0  ;;  %vm2892_vm2 = vcmp.le.f32.partialorder %v1115_v35, 0.7853982  ;;  %vm278_vm3 = vcmp.lt.s32.totalorder %v277_v20, 2  ;;  %2184 = vcosq.f32 %v1306_v59 }
 0x10d   :  { %v2179_v24 = vpop.eup %2178  ;;  %v162_v9 = vmul.f32 %v161_v15, %v159_v8  ;;  %v1203_v45 = vsel %vm2892_vm2, %v2373_v26, %v2840_v11  ;;  %v1002_v28 = vand.u32 3, %v376_v47  ;;  %2186 = vsinq.f32 %v1306_v59 }
 0x10e   :  { %v2181_v42 = vpop.eup %2180  ;;  %v283_v16 = vxor.u32 2147483648, %v2179_v24  ;;  %v1324_v35 = vsel %vm77_vm6, %v494_v32, %v1114_v38  ;;  %v381_v44 = vand.u32 3, %v380_v14  ;;  %v1304_v51 = vsub.s32 4, %v2585_v25 }
 0x10f   :  { %v2183_v60 = vpop.eup %2182  ;;  %v280_v63 = vxor.u32 2147483648, %v2181_v42  ;;  %v163_v61 = vxor.u32 2147483648, %v162_v9  ;;  %v166_v11 = vsel %vm81_vm13, %v165_v48, %v2800_v0  ;;  %2188 = vcosq.f32 %v1203_v45 }
 0x110   :  { %v284_v29 = vsel %vm282_vm1, %v283_v16, %v2181_v42  ;;  %v384_v1 = vxor.u32 2147483648, %v2183_v60  ;;  %2190 = vsinq.f32 %v1203_v45  ;;  %v387_v2 = vxor.u32 2147483648, %v2177_v17 }
 0x111   :  { %v281_v50 = vsel %vm279_vm12, %v2179_v24, %v280_v63  ;;  %v164_v19 = vsel %vm81_vm13, %v163_v61, %v162_v9  ;;  %v168_v4 = vsel %vm2871_vm11, 0, %v166_v11  ;;  %v1305_v10 = vsel %vm1220_vm0, %v1304_v51, %v2585_v25  ;;  %v1343_v61 = vpop.permute.xlu0 %1342 }
 0x112   :  { %v285_v57 = vsel %vm278_vm3, %v281_v50, %v284_v29  ;;  %v167_v5 = vsel %vm2871_vm11, %v2569_v30, %v164_v19  ;;  %v1201_v0 = vsub.s32 4, %v2548_v12  ;;  %vm383_vm4 = vcmp.eq.s32.totalorder %v381_v44, 0 }
 0x113   :  { %v286_v52 = vsel %vm275_vm7, nan, %v285_v57  ;;  %2192 = vcosq.f32 %v167_v5  ;;  %vm1004_vm5 = vcmp.eq.s32.totalorder %v1002_v28, 0  ;;  %v385_v39 = vsel %vm383_vm4, %v2177_v17, %v384_v1  ;;  %v1338_v57 = vpop.permute.xlu1 %1337 }
 0x114   :  { %v2107_v3 = vpack.c.bf16 %v1324_v35, %v286_v52  ;;  %2194 = vsinq.f32 %v167_v5  ;;  %vm386_vm7 = vcmp.eq.s32.totalorder %v381_v44, 2  ;;  %v1006_v34 = vsel %vm1004_vm5, %v2177_v17, %v384_v1 }
 0x115   :  { %vm1007_vm8 = vcmp.eq.s32.totalorder %v1002_v28, 2  ;;  %v172_v31 = vadd.s32 3, %v168_v4  ;;  %v388_v36 = vsel %vm386_vm7, %v387_v2, %v2183_v60  ;;  %v1307_v20 = vsel %vm2878_vm15, 0, %v1305_v10 }
 0x116   :  { %2108 = vmatprep.subr.bf16.mxu0 %v2107_v3  ;;  %v1009_v53 = vsel %vm1007_vm8, %v387_v2, %v2183_v60  ;;  %v2185_v21 = vpop.eup %2184  ;;  %v1202_v49 = vsel %vm1117_vm14, %v1201_v0, %v2548_v12  ;;  %vm382_vm0 = vcmp.lt.s32.totalorder %v381_v44, 2  ;;  %vm1003_vm9 = vcmp.lt.s32.totalorder %v1002_v28, 2 }
 0x117   :  { %v2187_v25 = vpop.eup %2186  ;;  %v389_v55 = vsel %vm382_vm0, %v385_v39, %v388_v36  ;;  %v1010_v46 = vsel %vm1003_vm9, %v1006_v34, %v1009_v53  ;;  %v1311_v18 = vand.u32 3, %v1307_v20  ;;  %v173_v7 = vand.u32 3, %v172_v31  ;;  %v1348_v3 = vpop.permute.xlu1 %1347 }
 0x118   :  { %v1204_v54 = vsel %vm2892_vm2, 0, %v1202_v49  ;;  %vm379_vm10 = vweird.f32 %v2381_v33  ;;  %v1314_v47 = vxor.u32 2147483648, %v2187_v25  ;;  %v1317_v22 = vxor.u32 2147483648, %v2185_v21  ;;  %v1353_v34 = vpop.permute.xlu0 %1352 }
 0x119   :  { %v2189_v58 = vpop.eup %2188  ;;  %v390_v62 = vsel %vm379_vm10, nan, %v389_v55  ;;  %v1011_v41 = vsel %vm379_vm10, nan, %v1010_v46  ;;  %vm1313_vm14 = vcmp.eq.s32.totalorder %v1311_v18, 0  ;;  %vm1316_vm11 = vcmp.eq.s32.totalorder %v1311_v18, 2 }
 0x11a   :  { %v2191_v56 = vpop.eup %2190  ;;  %v1208_v40 = vand.u32 3, %v1204_v54  ;;  %vm178_vm12 = vcmp.eq.s32.totalorder %v173_v7, 2  ;;  %v1214_v23 = vxor.u32 2147483648, %v2189_v58  ;;  %vm175_vm13 = vcmp.eq.s32.totalorder %v173_v7, 0 }
 0x11b   :  { %v1211_v14 = vxor.u32 2147483648, %v2191_v56  ;;  %v1315_v16 = vsel %vm1313_vm14, %v2185_v21, %v1314_v47  ;;  %v1318_v8 = vsel %vm1316_vm11, %v1317_v22, %v2187_v25  ;;  %vm171_vm15 = vweird.f32 %v2569_v30 }
 0x11c   :  { %vm174_vm1 = vcmp.lt.s32.totalorder %v173_v7, 2  ;;  %v1323_v15 = vsel %vm77_vm6, %v390_v62, %v1011_v41  ;;  %vm1312_vm2 = vcmp.lt.s32.totalorder %v1311_v18, 2  ;;  %vm1210_vm3 = vcmp.eq.s32.totalorder %v1208_v40, 0 }
 0x11d   :  { %v2193_v17 = vpop.eup %2192  ;;  %vm1213_vm4 = vcmp.eq.s32.totalorder %v1208_v40, 2  ;;  %v1319_v63 = vsel %vm1312_vm2, %v1315_v16, %v1318_v8  ;;  %v1212_v32 = vsel %vm1210_vm3, %v2189_v58, %v1211_v14  ;;  %vm1368_vm5 = vcmask 1043456  }
 0x11e   :  { %v2195_v12 = vpop.eup %2194  ;;  %v179_v37 = vxor.u32 2147483648, %v2193_v17  ;;  %v1215_v38 = vsel %vm1213_vm4, %v1214_v23, %v2191_v56  ;;  %vm1310_vm7 = vweird.f32 %v2376_v27  ;;  %vm1209_vm8 = vcmp.lt.s32.totalorder %v1208_v40, 2  ;;  %v1328_v27 = vld [vmem:[%s3127_s2 + $0x8] sm:$0xff] }
 0x11f   :  { %v176_v24 = vxor.u32 2147483648, %v2195_v12  ;;  %v1320_v30 = vsel %vm1310_vm7, nan, %v1319_v63  ;;  %v1216_v9 = vsel %vm1209_vm8, %v1212_v32, %v1215_v38  ;;  %vm1207_vm0 = vweird.f32 %v2373_v26  ;;  %v1329_v26 = vld [vmem:[%s3127_s2 + $0x10] sm:$0xff] }
 0x120   :  { %v180_v42 = vsel %vm178_vm12, %v179_v37, %v2195_v12  ;;  %vm1355_vm6 = vcmask 162816   ;;  %v1217_v48 = vsel %vm1207_vm0, nan, %v1216_v9  ;;  %vm1555_vm12 = vcmask 261120  }
 0x121   :  { %v177_v33 = vsel %vm175_vm13, %v2193_v17, %v176_v24 }
 0x122   :  { %v181_v59 = vsel %vm174_vm1, %v177_v33, %v180_v42 }
 0x123   :  { %v182_v60 = vsel %vm171_vm15, nan, %v181_v59 }
 0x124   :  { %v2109_v29 = vpack.c.bf16 %v1323_v15, %v182_v60 }
 0x126   :  { %2110 = vmatpush1.bf16.msra.mxu0 %v2109_v29 }
 0x127   :  { %2091 = vmatprep.subr.msk.mxu0 %vm1368_vm5, %v1320_v30 }
 0x12a   :  { %2092 = vmatpush1.msk.msra.mxu0 %vm1368_vm5, %v1217_v48 }
 0x12b   :  { %2093 = vmatmul.mubr.msk.f32.vlgmr.msra.gmra.mrb[0].mxu0 %vm1355_vm6, %v1327_v43 }
 0x12c   :  { %1445 = vmatprep.mubr.f32.mxu0 %v2251_v13 }
 0x12f   :  { %2094 = vmatmul.mubr.msk.f32.gmra.mrb[2].mxu0 %vm1355_vm6, %v1328_v27 }
 0x130   :  { %1451 = vmatprep.mubr.f32.mxu0 %v2251_v13 }
 0x133   :  { %2095 = vmatmul.mubr.msk.f32.gmra.mrb[4].mxu0 %vm1355_vm6, %v1329_v26 }
 0x134   :  { %1457 = vmatprep.mubr.f32.mxu0 %v2251_v13 }
 0x137   :  { %2096 = vmatmul.mubr.msk.f32.gmra.mrb[6].mxu0 %vm1355_vm6, %v1330_v6 }
 0x138   :  { %1831 = vmatprep.mubr.f32.mxu0 %v2251_v13 }
 0x1fe   :  { %v1441_v50 = vpop.f32.mrb[0].mxu0 }
 0x1ff   :  { %v1443_v45 = vpop.f32.mrb[1].mxu0  ;;  %v2953_v51 = vadd.f32 %v1441_v50, %v1338_v57 }
 0x200   :  { %v2955_v19 = vadd.f32 %v1443_v45, %v1338_v57 }
 0x201   :  { %v1472_v0 = vmul.f32 %v2953_v51, %v2953_v51 }
 0x202   :  { %v1447_v28 = vpop.f32.mrb[2].mxu0  ;;  %v1473_v31 = vmul.f32 %v2955_v19, %v2955_v19 }
 0x203   :  { %v2949_v52 = vadd.f32 %v1447_v28, %v1343_v61  ;;  %v1449_v35 = vpop.f32.mrb[3].mxu0 }
 0x204   :  { %v2951_v44 = vadd.f32 %v1449_v35, %v1343_v61 }
 0x205   :  { %v1474_v5 = vmul.f32 %v2949_v52, %v2949_v52 }
 0x206   :  { %v1453_v11 = vpop.f32.mrb[4].mxu0  ;;  %v1475_v4 = vmul.f32 %v2951_v44, %v2951_v44 }
 0x207   :  { %v2959_v1 = vadd.f32 %v1453_v11, %v1348_v3  ;;  %v1455_v2 = vpop.f32.mrb[5].mxu0  ;;  %v1480_v20 = vadd.f32 %v1474_v5, %v1472_v0 }
 0x208   :  { %v2963_v10 = vadd.f32 %v1455_v2, %v1348_v3  ;;  %v1489_v25 = vadd.f32 %v1475_v4, %v1473_v31 }
 0x209   :  { %v1476_v39 = vmul.f32 %v2959_v1, %v2959_v1 }
 0x20a   :  { %v1477_v36 = vmul.f32 %v2963_v10, %v2963_v10  ;;  %v1459_v53 = vpop.f32.mrb[6].mxu0 }
 0x20b   :  { %v2973_v21 = vadd.f32 %v1459_v53, %v1353_v34  ;;  %v1461_v49 = vpop.f32.mrb[7].mxu0  ;;  %v1481_v46 = vadd.f32 %v1480_v20, %v1476_v39 }
 0x20c   :  { %v2975_v55 = vadd.f32 %v1461_v49, %v1353_v34  ;;  %v1490_v58 = vadd.f32 %v1489_v25, %v1477_v36  ;;  %v1464_v25 = vld [vmem:[%s3129_s4] sm:$0xff] }
 0x20d   :  { %v1478_v18 = vmul.f32 %v2973_v21, %v2973_v21 }
 0x20e   :  { %v1479_v7 = vmul.f32 %v2975_v55, %v2975_v55 }
 0x20f   :  { %v1482_v54 = vadd.f32 %v1481_v46, %v1478_v18  ;;  %v1465_v46 = vld [vmem:[%s3129_s4 + $0x8] sm:$0xff]  ;;  %v1466_v18 = vld [vmem:[%s3129_s4 + $0x10] sm:$0xff] }
 0x210   :  { %v1491_v56 = vadd.f32 %v1490_v58, %v1479_v7  ;;  %v1467_v58 = vld [vmem:[%s3129_s4 + $0x18] sm:$0xff] }
 0x211   :  { %v1483_v47 = vrot.slane %v1482_v54, 4 }
 0x212   :  { %v1492_v22 = vrot.slane %v1491_v56, 4 }
 0x213   :  { %v1484_v17 = vadd.f32 %v1483_v47, %v1482_v54  ;;  %v1543_v47 = vpop.permute.xlu0 %1542 }
 0x214   :  { %v1493_v62 = vadd.f32 %v1492_v22, %v1491_v56  ;;  %v1538_v56 = vpop.permute.xlu1 %1537 }
 0x215   :  { %v1485_v41 = vrot.slane %v1484_v17, 2 }
 0x216   :  { %v1494_v12 = vrot.slane %v1493_v62, 2 }
 0x217   :  { %v1486_v37 = vadd.f32 %v1485_v41, %v1484_v17 }
 0x218   :  { %v1495_v40 = vadd.f32 %v1494_v12, %v1493_v62 }
 0x219   :  { %v1487_v24 = vrot.slane %v1486_v37, 1 }
 0x21a   :  { %v1496_v14 = vrot.slane %v1495_v40, 1 }
 0x21b   :  { %v1488_v23 = vadd.f32 %v1487_v24, %v1486_v37  ;;  %v1548_v24 = vpop.permute.xlu1 %1547 }
 0x21c   :  { %v1497_v42 = vadd.f32 %v1496_v14, %v1495_v40 }
 0x21d   :  { %v1499_v16 = vmul.f32 0.03125, %v1488_v23 }
 0x21e   :  { %v1500_v8 = vmul.f32 0.03125, %v1497_v42 }
 0x21f   :  { %2196 = vrsqrt.f32 %v1499_v16  ;;  %vm1503_vm9 = vcmp.eq.f32.partialorder %v1499_v16, inf  ;;  %v1506_v60 = vand.u32 2147483648, %v1499_v16  ;;  %vm1505_vm10 = vcmp.eq.f32.partialorder %v1499_v16, 0.0 }
 0x220   :  { %2198 = vrsqrt.f32 %v1500_v8  ;;  %vm1510_vm14 = vcmp.eq.f32.partialorder %v1500_v8, inf  ;;  %v1513_v38 = vand.u32 2147483648, %v1500_v8  ;;  %vm1512_vm11 = vcmp.eq.f32.partialorder %v1500_v8, 0.0 }
 0x229   :  { %v2197_v33 = vpop.eup %2196 }
 0x22a   :  { %v2199_v15 = vpop.eup %2198  ;;  %v1502_v59 = vmul.f32 %v2197_v33, %v1499_v16 }
 0x22b   :  { %v1509_v63 = vmul.f32 %v2199_v15, %v1500_v8 }
 0x22c   :  { %v1504_v32 = vsel %vm1503_vm9, %v1499_v16, %v1502_v59 }
 0x22d   :  { %v1507_v29 = vsel %vm1505_vm10, %v1506_v60, %v1504_v32  ;;  %v1511_v30 = vsel %vm1510_vm14, %v1500_v8, %v1509_v63  ;;  %v1553_v60 = vpop.permute.xlu0 %1552 }
 0x22e   :  { %v1515_v9 = vadd.f32 1e-06, %v1507_v29  ;;  %v1514_v43 = vsel %vm1512_vm11, %v1513_v38, %v1511_v30 }
 0x22f   :  { %v1516_v48 = vadd.f32 1e-06, %v1514_v43 }
 0x230   :  { %2200 = vrcp.f32 %v1515_v9 }
 0x231   :  { %2202 = vrcp.f32 %v1516_v48 }
 0x23a   :  { %v2201_v27 = vpop.eup %2200 }
 0x23b   :  { %v2203_v26 = vpop.eup %2202  ;;  %v1518_v6 = vmul.f32 %v2201_v27, %v2953_v51  ;;  %v1521_v50 = vmul.f32 %v2201_v27, %v2949_v52  ;;  %v1525_v35 = vmul.f32 %v2201_v27, %v2973_v21  ;;  %v1523_v5 = vmul.f32 %v2201_v27, %v2959_v1 }
 0x23c   :  { %v1526_v45 = vmul.f32 %v2203_v26, %v2975_v55  ;;  %v1520_v57 = vmul.f32 %v2203_v26, %v2955_v19  ;;  %v1522_v61 = vmul.f32 %v2203_v26, %v2951_v44  ;;  %v1524_v28 = vmul.f32 %v2203_v26, %v2963_v10 }
 0x23d   :  { %v1527_v3 = vmax.f32 %v1518_v6, 0.0  ;;  %v1529_v11 = vmax.f32 %v1521_v50, 0.0  ;;  %v1533_v31 = vmax.f32 %v1525_v35, 0.0  ;;  %v1531_v53 = vmax.f32 %v1523_v5, 0.0 }
 0x23e   :  { %v1534_v2 = vmax.f32 %v1526_v45, 0.0  ;;  %v1528_v4 = vmax.f32 %v1520_v57, 0.0  ;;  %v1530_v0 = vmax.f32 %v1522_v61, 0.0  ;;  %v1532_v39 = vmax.f32 %v1524_v28, 0.0 }
 0x23f   :  { %v2113_v36 = vpack.c.bf16 %v1529_v11, %v1527_v3  ;;  %v2117_v49 = vpack.c.bf16 %v1533_v31, %v1531_v53 }
 0x240   :  { %v2111_v34 = vpack.c.bf16 %v1530_v0, %v1528_v4  ;;  %v2115_v20 = vpack.c.bf16 %v1534_v2, %v1532_v39 }
 0x242   :  { %2112 = vmatprep.subr.bf16.mxu1 %v2111_v34 }
 0x243   :  { %2114 = vmatpush1.bf16.msra.mxu1 %v2113_v36 }
 0x244   :  { %2116 = vmatprep.subr.bf16.mxu1 %v2115_v20 }
 0x247   :  { %2118 = vmatpush1.bf16.msra.mxu1 %v2117_v49 }
 0x24a   :  { %2097 = vmatmul.mubr.msk.f32.vlgmr.msra.gmra.mrb[0].mxu1 %vm1555_vm12, %v1464_v25 }
 0x24b   :  { %1638 = vmatprep.mubr.f32.mxu1 %v2251_v13 }
 0x24e   :  { %2098 = vmatmul.mubr.msk.f32.gmra.mrb[2].mxu1 %vm1555_vm12, %v1465_v46 }
 0x24f   :  { %1644 = vmatprep.mubr.f32.mxu1 %v2251_v13 }
 0x252   :  { %2099 = vmatmul.mubr.msk.f32.gmra.mrb[4].mxu1 %vm1555_vm12, %v1466_v18 }
 0x253   :  { %1650 = vmatprep.mubr.f32.mxu1 %v2251_v13 }
 0x256   :  { %2100 = vmatmul.mubr.msk.f32.gmra.mrb[6].mxu1 %vm1555_vm12, %v1467_v58 }
 0x257   :  { %2010 = vmatprep.mubr.f32.mxu1 %v2251_v13 }
 0x31d   :  { %v1634_v7 = vpop.f32.mrb[0].mxu1 }
 0x31e   :  { %v1636_v54 = vpop.f32.mrb[1].mxu1  ;;  %v1635_v17 = vadd.f32 %v1634_v7, %v1538_v56 }
 0x31f   :  { %v1637_v12 = vadd.f32 %v1636_v54, %v1538_v56 }
 0x320   :  { %v3016_v42 = vadd.f32 %v1635_v17, %v2953_v51 }
 0x321   :  { %v1640_v22 = vpop.f32.mrb[2].mxu1  ;;  %v3019_v33 = vadd.f32 %v1637_v12, %v2955_v19 }
 0x322   :  { %v1641_v62 = vadd.f32 %v1640_v22, %v1543_v47  ;;  %v1642_v41 = vpop.f32.mrb[3].mxu1  ;;  %v1673_v32 = vmul.f32 %v3016_v42, %v3016_v42 }
 0x323   :  { %v1643_v37 = vadd.f32 %v1642_v41, %v1543_v47 }
 0x324   :  { %v3010_v40 = vadd.f32 %v1641_v62, %v2949_v52 }
 0x325   :  { %v3013_v14 = vadd.f32 %v1643_v37, %v2951_v44  ;;  %v1646_v23 = vpop.f32.mrb[4].mxu1 }
 0x326   :  { %v1647_v16 = vadd.f32 %v1646_v23, %v1548_v24  ;;  %v1648_v8 = vpop.f32.mrb[5].mxu1  ;;  %v1675_v59 = vmul.f32 %v3010_v40, %v3010_v40 }
 0x327   :  { %v1649_v15 = vadd.f32 %v1648_v8, %v1548_v24  ;;  %v1676_v44 = vmul.f32 %v3013_v14, %v3013_v14 }
 0x328   :  { %v3024_v52 = vadd.f32 %v1647_v16, %v2959_v1  ;;  %v1674_v1 = vmul.f32 %v3019_v33, %v3019_v33  ;;  %v1681_v43 = vadd.f32 %v1675_v59, %v1673_v32 }
 0x329   :  { %v3029_v63 = vadd.f32 %v1649_v15, %v2963_v10  ;;  %v1652_v51 = vpop.f32.mrb[6].mxu1 }
 0x32a   :  { %v1677_v19 = vmul.f32 %v3024_v52, %v3024_v52  ;;  %v1653_v38 = vadd.f32 %v1652_v51, %v1553_v60  ;;  %v1654_v29 = vpop.f32.mrb[7].mxu1  ;;  %v1690_v48 = vadd.f32 %v1676_v44, %v1674_v1 }
 0x32b   :  { %v1678_v30 = vmul.f32 %v3029_v63, %v3029_v63  ;;  %v1655_v9 = vadd.f32 %v1654_v29, %v1553_v60 }
 0x32c   :  { %v3040_v10 = vadd.f32 %v1653_v38, %v2973_v21  ;;  %v1682_v26 = vadd.f32 %v1681_v43, %v1677_v19 }
 0x32d   :  { %v3043_v27 = vadd.f32 %v1655_v9, %v2975_v55  ;;  %v1691_v50 = vadd.f32 %v1690_v48, %v1678_v30  ;;  %v1665_v48 = vld [vmem:[%s3131_s6] sm:$0xff] }
 0x32e   :  { %v1679_v6 = vmul.f32 %v3040_v10, %v3040_v10 }
 0x32f   :  { %v1680_v45 = vmul.f32 %v3043_v27, %v3043_v27 }
 0x330   :  { %v1683_v57 = vadd.f32 %v1682_v26, %v1679_v6  ;;  %v1666_v26 = vld [vmem:[%s3131_s6 + $0x8] sm:$0xff]  ;;  %v1667_v6 = vld [vmem:[%s3131_s6 + $0x10] sm:$0xff] }
 0x331   :  { %v1692_v61 = vadd.f32 %v1691_v50, %v1680_v45  ;;  %v1668_v50 = vld [vmem:[%s3131_s6 + $0x18] sm:$0xff]  ;;  %v1738_v45 = vpop.permute.xlu1 %1737 }
 0x332   :  { %v1684_v28 = vrot.slane %v1683_v57, 4 }
 0x333   :  { %v1693_v35 = vrot.slane %v1692_v61, 4 }
 0x334   :  { %v1685_v3 = vadd.f32 %v1684_v28, %v1683_v57 }
 0x335   :  { %v1694_v11 = vadd.f32 %v1693_v35, %v1692_v61 }
 0x336   :  { %v1686_v21 = vrot.slane %v1685_v3, 2 }
 0x337   :  { %v1695_v5 = vrot.slane %v1694_v11, 2 }
 0x338   :  { %v1687_v2 = vadd.f32 %v1686_v21, %v1685_v3  ;;  %v1743_v3 = vpop.permute.xlu0 %1742 }
 0x339   :  { %v1696_v4 = vadd.f32 %v1695_v5, %v1694_v11 }
 0x33a   :  { %v1688_v55 = vrot.slane %v1687_v2, 1 }
 0x33b   :  { %v1697_v0 = vrot.slane %v1696_v4, 1 }
 0x33c   :  { %v1689_v39 = vadd.f32 %v1688_v55, %v1687_v2 }
 0x33d   :  { %v1698_v34 = vadd.f32 %v1697_v0, %v1696_v4 }
 0x33e   :  { %v1699_v31 = vmul.f32 0.03125, %v1689_v39  ;;  %v1748_v39 = vpop.permute.xlu1 %1747 }
 0x33f   :  { %v1700_v36 = vmul.f32 0.03125, %v1698_v34 }
 0x340   :  { %2204 = vrsqrt.f32 %v1699_v31  ;;  %vm1703_vm13 = vcmp.eq.f32.partialorder %v1699_v31, inf  ;;  %v1706_v25 = vand.u32 2147483648, %v1699_v31  ;;  %vm1705_vm15 = vcmp.eq.f32.partialorder %v1699_v31, 0.0 }
 0x341   :  { %2206 = vrsqrt.f32 %v1700_v36  ;;  %vm1710_vm1 = vcmp.eq.f32.partialorder %v1700_v36, inf  ;;  %v1713_v58 = vand.u32 2147483648, %v1700_v36  ;;  %vm1712_vm2 = vcmp.eq.f32.partialorder %v1700_v36, 0.0 }
 0x34a   :  { %v2205_v53 = vpop.eup %2204 }
 0x34b   :  { %v2207_v20 = vpop.eup %2206  ;;  %v1702_v49 = vmul.f32 %v2205_v53, %v1699_v31 }
 0x34c   :  { %v1709_v46 = vmul.f32 %v2207_v20, %v1700_v36 }
 0x34d   :  { %v1704_v18 = vsel %vm1703_vm13, %v1699_v31, %v1702_v49 }
 0x34e   :  { %v1707_v7 = vsel %vm1705_vm15, %v1706_v25, %v1704_v18  ;;  %v1711_v54 = vsel %vm1710_vm1, %v1700_v36, %v1709_v46  ;;  %v1753_v46 = vpop.permute.xlu0 %1752 }
 0x34f   :  { %v1715_v56 = vadd.f32 1e-06, %v1707_v7  ;;  %v1714_v47 = vsel %vm1712_vm2, %v1713_v58, %v1711_v54 }
 0x350   :  { %v1716_v22 = vadd.f32 1e-06, %v1714_v47 }
 0x351   :  { %2208 = vrcp.f32 %v1715_v56 }
 0x352   :  { %2210 = vrcp.f32 %v1716_v22 }
 0x35b   :  { %v2209_v17 = vpop.eup %2208 }
 0x35c   :  { %v2211_v62 = vpop.eup %2210  ;;  %v1718_v41 = vmul.f32 %v2209_v17, %v3016_v42  ;;  %v1721_v12 = vmul.f32 %v2209_v17, %v3010_v40  ;;  %v1725_v8 = vmul.f32 %v2209_v17, %v3040_v10  ;;  %v1723_v60 = vmul.f32 %v2209_v17, %v3024_v52 }
 0x35d   :  { %v1720_v37 = vmul.f32 %v2211_v62, %v3019_v33  ;;  %v1722_v24 = vmul.f32 %v2211_v62, %v3013_v14  ;;  %v1724_v23 = vmul.f32 %v2211_v62, %v3029_v63  ;;  %v1726_v16 = vmul.f32 %v2211_v62, %v3043_v27 }
 0x35e   :  { %v1727_v15 = vmax.f32 %v1718_v41, 0.0  ;;  %v1729_v59 = vmax.f32 %v1721_v12, 0.0  ;;  %v1733_v29 = vmax.f32 %v1725_v8, 0.0  ;;  %v1731_v30 = vmax.f32 %v1723_v60, 0.0 }
 0x35f   :  { %v1728_v44 = vmax.f32 %v1720_v37, 0.0  ;;  %v1730_v51 = vmax.f32 %v1722_v24, 0.0  ;;  %v1732_v32 = vmax.f32 %v1724_v23, 0.0  ;;  %v1734_v19 = vmax.f32 %v1726_v16, 0.0 }
 0x360   :  { %v2121_v1 = vpack.c.bf16 %v1729_v59, %v1727_v15  ;;  %v2125_v43 = vpack.c.bf16 %v1733_v29, %v1731_v30 }
 0x361   :  { %v2119_v38 = vpack.c.bf16 %v1730_v51, %v1728_v44  ;;  %v2123_v9 = vpack.c.bf16 %v1734_v19, %v1732_v32 }
 0x363   :  { %2120 = vmatprep.subr.bf16.mxu0 %v2119_v38 }
 0x364   :  { %2122 = vmatpush1.bf16.msra.mxu0 %v2121_v1 }
 0x365   :  { %2124 = vmatprep.subr.bf16.mxu0 %v2123_v9 }
 0x368   :  { %2126 = vmatpush1.bf16.msra.mxu0 %v2125_v43 }
 0x36b   :  { %2101 = vmatmul.mubr.msk.f32.vlgmr.msra.gmra.mrb[8].mxu0 %vm1555_vm12, %v1665_v48 }
 0x36c   :  { %1837 = vmatprep.mubr.f32.mxu0 %v2251_v13 }
 0x36f   :  { %2102 = vmatmul.mubr.msk.f32.gmra.mrb[10].mxu0 %vm1555_vm12, %v1666_v26 }
 0x370   :  { %1843 = vmatprep.mubr.f32.mxu0 %v2251_v13 }
 0x373   :  { %2103 = vmatmul.mubr.msk.f32.gmra.mrb[12].mxu0 %vm1555_vm12, %v1667_v6 }
 0x374   :  { %1849 = vmatprep.mubr.f32.mxu0 %v2251_v13 }
 0x377   :  { %2104 = vmatmul.mubr.msk.f32.gmra.mrb[14].mxu0 %vm1555_vm12, %v1668_v50 }
 0x43e   :  { %v1833_v57 = vpop.f32.mrb[8].mxu0 }
 0x43f   :  { %v1834_v61 = vadd.f32 %v1833_v57, %v1738_v45  ;;  %v1835_v28 = vpop.f32.mrb[9].mxu0 }
 0x440   :  { %v1836_v35 = vadd.f32 %v1835_v28, %v1738_v45 }
 0x441   :  { %v3077_v21 = vadd.f32 %v1834_v61, %v3016_v42 }
 0x442   :  { %v1839_v11 = vpop.f32.mrb[10].mxu0  ;;  %v3080_v4 = vadd.f32 %v1836_v35, %v3019_v33 }
 0x443   :  { %v1840_v5 = vadd.f32 %v1839_v11, %v1743_v3  ;;  %v1841_v2 = vpop.f32.mrb[11].mxu0  ;;  %v1868_v36 = vmul.f32 %v3077_v21, %v3077_v21 }
 0x444   :  { %v1842_v55 = vadd.f32 %v1841_v2, %v1743_v3  ;;  %v1869_v33 = vmul.f32 %v3080_v4, %v3080_v4 }
 0x445   :  { %v3083_v0 = vadd.f32 %v1840_v5, %v3010_v40 }
 0x446   :  { %v3086_v34 = vadd.f32 %v1842_v55, %v3013_v14  ;;  %v1845_v31 = vpop.f32.mrb[12].mxu0 }
 0x447   :  { %v1870_v42 = vmul.f32 %v3083_v0, %v3083_v0  ;;  %v1846_v53 = vadd.f32 %v1845_v31, %v1748_v39  ;;  %v1847_v20 = vpop.f32.mrb[13].mxu0 }
 0x448   :  { %v1871_v40 = vmul.f32 %v3086_v34, %v3086_v34  ;;  %v1848_v49 = vadd.f32 %v1847_v20, %v1748_v39 }
 0x449   :  { %v1876_v25 = vadd.f32 %v1870_v42, %v1868_v36  ;;  %v1860_v14 = vadd.f32 %v1846_v53, %v3024_v52 }
 0x44a   :  { %v1885_v18 = vadd.f32 %v1871_v40, %v1869_v33  ;;  %v1861_v58 = vadd.f32 %v1848_v49, %v3029_v63  ;;  %v1851_v7 = vpop.f32.mrb[14].mxu0 }
 0x44b   :  { %v1872_v54 = vmul.f32 %v1860_v14, %v1860_v14  ;;  %v1852_v56 = vadd.f32 %v1851_v7, %v1753_v46  ;;  %v1853_v47 = vpop.f32.mrb[15].mxu0 }
 0x44c   :  { %v1873_v22 = vmul.f32 %v1861_v58, %v1861_v58  ;;  %v1854_v17 = vadd.f32 %v1853_v47, %v1753_v46 }
 0x44d   :  { %v1877_v62 = vadd.f32 %v1876_v25, %v1872_v54  ;;  %v1862_v41 = vadd.f32 %v1852_v56, %v3040_v10 }
 0x44e   :  { %v1886_v12 = vadd.f32 %v1885_v18, %v1873_v22  ;;  %v1863_v37 = vadd.f32 %v1854_v17, %v3043_v27 }
 0x44f   :  { %v1874_v24 = vmul.f32 %v1862_v41, %v1862_v41 }
 0x450   :  { %v1875_v23 = vmul.f32 %v1863_v37, %v1863_v37 }
 0x451   :  { %v1878_v16 = vadd.f32 %v1877_v62, %v1874_v24  ;;  %v1938_v62 = vpop.permute.xlu0 %1937 }
 0x452   :  { %v1887_v52 = vadd.f32 %v1886_v12, %v1875_v23 }
 0x453   :  { %v1879_v8 = vrot.slane %v1878_v16, 4 }
 0x454   :  { %v1888_v15 = vrot.slane %v1887_v52, 4 }
 0x455   :  { %v1880_v59 = vadd.f32 %v1879_v8, %v1878_v16 }
 0x456   :  { %v1889_v63 = vadd.f32 %v1888_v15, %v1887_v52 }
 0x457   :  { %v1881_v60 = vrot.slane %v1880_v59, 2 }
 0x458   :  { %v1890_v44 = vrot.slane %v1889_v63, 2 }
 0x459   :  { %v1882_v51 = vadd.f32 %v1881_v60, %v1880_v59 }
 0x45a   :  { %v1891_v32 = vadd.f32 %v1890_v44, %v1889_v63 }
 0x45b   :  { %v1883_v19 = vrot.slane %v1882_v51, 1 }
 0x45c   :  { %v1892_v38 = vrot.slane %v1891_v32, 1 }
 0x45d   :  { %v1884_v29 = vadd.f32 %v1883_v19, %v1882_v51 }
 0x45e   :  { %v1893_v1 = vadd.f32 %v1892_v38, %v1891_v32 }
 0x45f   :  { %v1894_v10 = vmul.f32 0.03125, %v1884_v29 }
 0x460   :  { %v1895_v30 = vmul.f32 0.03125, %v1893_v1 }
 0x461   :  { %2212 = vrsqrt.f32 %v1894_v10  ;;  %vm1898_vm3 = vcmp.eq.f32.partialorder %v1894_v10, inf  ;;  %v1901_v48 = vand.u32 2147483648, %v1894_v10  ;;  %vm1900_vm4 = vcmp.eq.f32.partialorder %v1894_v10, 0.0 }
 0x462   :  { %2214 = vrsqrt.f32 %v1895_v30  ;;  %vm1905_vm5 = vcmp.eq.f32.partialorder %v1895_v30, inf  ;;  %v1908_v50 = vand.u32 2147483648, %v1895_v30  ;;  %vm1907_vm7 = vcmp.eq.f32.partialorder %v1895_v30, 0.0 }
 0x46b   :  { %v2213_v27 = vpop.eup %2212 }
 0x46c   :  { %v2215_v9 = vpop.eup %2214  ;;  %v1897_v43 = vmul.f32 %v2213_v27, %v1894_v10 }
 0x46d   :  { %v1904_v26 = vmul.f32 %v2215_v9, %v1895_v30 }
 0x46e   :  { %v1899_v6 = vsel %vm1898_vm3, %v1894_v10, %v1897_v43 }
 0x46f   :  { %v1902_v45 = vsel %vm1900_vm4, %v1901_v48, %v1899_v6  ;;  %v1906_v57 = vsel %vm1905_vm5, %v1895_v30, %v1904_v26 }
 0x470   :  { %v1910_v61 = vadd.f32 1e-06, %v1902_v45  ;;  %v1909_v28 = vsel %vm1907_vm7, %v1908_v50, %v1906_v57 }
 0x471   :  { %v1911_v35 = vadd.f32 1e-06, %v1909_v28 }
 0x472   :  { %2216 = vrcp.f32 %v1910_v61 }
 0x473   :  { %2218 = vrcp.f32 %v1911_v35 }
 0x47c   :  { %v2217_v3 = vpop.eup %2216 }
 0x47d   :  { %v2219_v11 = vpop.eup %2218  ;;  %v1918_v5 = vmul.f32 %v2217_v3, %v1860_v14  ;;  %v1920_v2 = vmul.f32 %v2217_v3, %v1862_v41  ;;  %v1913_v55 = vmul.f32 %v2217_v3, %v3077_v21  ;;  %v1916_v39 = vmul.f32 %v2217_v3, %v3083_v0  ;;  %v1865_v0 = vld [vmem:[%s3133_s8 + $0x8] sm:$0xff] }
 0x47e   :  { %v1921_v31 = vmul.f32 %v2219_v11, %v1863_v37  ;;  %v1915_v36 = vmul.f32 %v2219_v11, %v3080_v4  ;;  %v1917_v42 = vmul.f32 %v2219_v11, %v3086_v34  ;;  %v1919_v53 = vmul.f32 %v2219_v11, %v1861_v58  ;;  %v1864_v4 = vld [vmem:[%s3133_s8] sm:$0xff]  ;;  %v1933_v34 = vpop.permute.xlu1 %1932  ;;  %s2220_s8 = scalar_lea.vmem %s2033_s0, 512 }
 0x47f   :  { %v1926_v20 = vmax.f32 %v1918_v5, 0.0  ;;  %v1928_v33 = vmax.f32 %v1920_v2, 0.0  ;;  %v1922_v40 = vmax.f32 %v1913_v55, 0.0  ;;  %v1924_v49 = vmax.f32 %v1916_v39, 0.0  ;;  %p2221_p0 = scmp.ne.s32.totalorder %s2033_s0, %s2220_s8  ;;  %p2226_p2 = scmp.lt.s32.totalorder %s2220_s8, %s2220_s8 }
 0x480   :  { %v1929_v25 = vmax.f32 %v1921_v31, 0.0  ;;  %v1923_v46 = vmax.f32 %v1915_v36, 0.0  ;;  %v1925_v18 = vmax.f32 %v1917_v42, 0.0  ;;  %v1927_v7 = vmax.f32 %v1919_v53, 0.0 }
 0x481   :  { %v2133_v14 = vpack.c.bf16 %v1928_v33, %v1926_v20  ;;  %v2129_v54 = vpack.c.bf16 %v1924_v49, %v1922_v40  ;;  %p2227_p3 = por %p2226_p2, %p2225_p1 }
 0x482   :  { %v2127_v56 = vpack.c.bf16 %v1925_v18, %v1923_v46  ;;  %v2131_v21 = vpack.c.bf16 %v1929_v25, %v1927_v7 }
 0x483   :  { %p2228_p4 = pnand %p2227_p3, %p2221_p0 }
 0x484   :  { %2128 = vmatprep.subr.bf16.mxu1 %v2127_v56 }
 0x485   :  { %2130 = vmatpush1.bf16.msra.mxu1 %v2129_v54 }
 0x486   :  { %2132 = vmatprep.subr.bf16.mxu1 %v2131_v21 }
 0x489   :  { %2134 = vmatpush1.bf16.msra.mxu1 %v2133_v14 }
 0x48c   :  { %2105 = vmatmul.mubr.msk.f32.vlgmr.msra.gmra.mrb[8].mxu1 %vm1555_vm12, %v1864_v4 }
 0x48d   :  { %2016 = vmatprep.mubr.f32.mxu1 %v2251_v13 }
 0x490   :  { %2106 = vmatmul.mubr.msk.f32.gmra.mrb[10].mxu1 %vm1555_vm12, %v1865_v0 }
 0x55f   :  { %v2012_v58 = vpop.f32.mrb[8].mxu1 }
 0x560   :  { %v2013_v47 = vadd.f32 %v2012_v58, %v1933_v34  ;;  %v2014_v22 = vpop.f32.mrb[9].mxu1 }
 0x561   :  { %v2015_v17 = vadd.f32 %v2014_v22, %v1933_v34 }
 0x562   :  { %2023 = vst [vmem:[#allocation2] sm:$0xff] %v2013_v47 }
 0x563   :  { %2024 = vst [vmem:[#allocation2 + $0x8] sm:$0xff] %v2015_v17  ;;  %v2018_v41 = vpop.f32.mrb[10].mxu1 }
 0x564   :  { %v2019_v12 = vadd.f32 %v2018_v41, %v1938_v62  ;;  %v2020_v37 = vpop.f32.mrb[11].mxu1 }
 0x565   :  { %v2021_v13 = vadd.f32 %v2020_v37, %v1938_v62 }
 0x566   :  { %2025 = vst [vmem:[#allocation2 + $0x10] sm:$0xff] %v2019_v12 }
 0x567   :  { %2026 = vst [vmem:[#allocation2 + $0x18] sm:$0xff] %v2021_v13 }
 0x568   :  { %2231 = shalt.err (!%p2228_p4)
}
 0x569   :  { %s2232_s26 = scalar_lea.hbm %s3135_s10, 512 }
 0x56a   :  { %p2233_p5 = scmp.ne.s32.totalorder %s3135_s10, %s2232_s26  ;;  %p2236_p6 = scmp.lt.u32.totalorder %s2232_s26, %s3135_s10 }
 0x56c   :  { %p2238_p7 = pnand %p2236_p6, %p2233_p5 }
 0x56e   :  { %2241 = shalt.err (!%p2238_p7)
}
 0x56f   :  { %s2253_s2 = smov 256   ;;  %s2254_s30 = smov 16  }
 0x570   :  { %2038 = dma.vmem_to_hbm [thread:$0]  %s2033_s0, 512, %s3135_s10, [#allocation3], %s2253_s2, %s2253_s2, %s2254_s30  }
 0x571   :  { %2242 = dma.done.wait [#allocation3], 512  }
 0x572   :  { %2243 = vsyncadd [#allocation3], 4294966784 }
 0x573   :  { %2042 = vsyncpa [#allocation3], 1 }

</bundles_post_ra>
